<compile_context>
chip_gen: v7x
topology: tpu7x:2x2x1
jax: 0.10.0
libtpu: 0.0.40
codegen_flags: <defaults>
</compile_context>

<pallas_src>
import functools
import math

import jax
import jax.numpy as jnp
from jax.experimental import pallas as pl
from jax.experimental.pallas import tpu as pltpu


# ----------------------------- in-kernel helpers -----------------------------

def _layernorm(x, w, eps=1e-5):
    # LayerNorm(bias=False): (x - mu) / sqrt(var + eps) * w     (all f32)
    mu = jnp.mean(x, axis=-1, keepdims=True)
    var = jnp.mean((x - mu) ** 2, axis=-1, keepdims=True)
    return (x - mu) * jax.lax.rsqrt(var + eps) * w


# ------------------------------ fused forward kernel -------------------------

def _fused_forward_kernel(B, T, H,
                          x0_ref, ln_ref,
                          sa_qkv_ref, sa_out_ref,
                          ca_q_ref, ca_kv_ref, ca_out_ref,
                          ff1_ref, ff2_ref,
                          proj_w_ref, proj_b_ref, tgt_ref,
                          logits_ref, loss_ref,
                          x_scr):
    N, E = x0_ref.shape          # N = B*T
    hd = E // H
    layer = pl.program_id(0)
    n_layers = pl.num_programs(0)

    # initialize the resident residual stream with the input embeddings
    @pl.when(layer == 0)
    def _():
        x_scr[...] = x0_ref[...]

    # causal mask generated in-kernel (VPU filler, no HBM traffic)
    row = jax.lax.broadcasted_iota(jnp.int32, (T, T), 0)
    col = jax.lax.broadcasted_iota(jnp.int32, (T, T), 1)
    mask = jnp.where(row >= col, 0.0, -1e30).astype(jnp.float32)          # (T, T)

    x = x_scr[...]                                                        # (N, E) f32
    mem_b = x0_ref[...].astype(jnp.bfloat16)                              # memory (K/V source)

    ln_all = ln_ref[0]                                                    # (3, E) f32
    scale = 1.0 / math.sqrt(hd)

    def attention(q_all, k_all, v_all, w_out_t):
        # q_all/k_all/v_all: (N, E) bf16; w_out_t: (E, E) bf16 (= W_out^T).
        # Heads are statically unrolled; within a head everything is batched over B
        # with single-batch-dim einsums.  Head outputs are folded directly through the
        # matching rows of W_out^T (no concatenate).
        out = jnp.zeros((N, E), jnp.float32)
        for h in range(H):
            sl = slice(h * hd, (h + 1) * hd)
            qh = q_all[:, sl].reshape(B, T, hd)
            kh = k_all[:, sl].reshape(B, T, hd)
            vh = v_all[:, sl].reshape(B, T, hd)
            s = jnp.einsum('btd,bsd->bts', qh, kh,
                           preferred_element_type=jnp.float32) * scale    # (B,T,T) f32
            s = s + mask[None, :, :]
            s = s - jnp.max(s, axis=-1, keepdims=True)
            p = jnp.exp(s)
            p = p * pl.reciprocal(jnp.sum(p, axis=-1, keepdims=True), approx=True)
            oh = jnp.einsum('bts,bsd->btd', p.astype(jnp.bfloat16), vh,
                            preferred_element_type=jnp.float32)           # (B,T,hd)
            oh = oh.reshape(N, hd).astype(jnp.bfloat16)
            out = out + jnp.dot(oh, w_out_t[sl, :],
                                preferred_element_type=jnp.float32)
        return out

    # ---- self-attention (pre-LN), fused QKV projection ----
    h1 = _layernorm(x, ln_all[0:1, :]).astype(jnp.bfloat16)
    qkv = jnp.dot(h1, sa_qkv_ref[0],
                  preferred_element_type=jnp.float32).astype(jnp.bfloat16)  # (N, 3E)
    q, k, v = qkv[:, :E], qkv[:, E:2 * E], qkv[:, 2 * E:]
    x = x + attention(q, k, v, sa_out_ref[0])

    # ---- cross-attention against memory (pre-LN); memory_mask == causal mask ----
    h2 = _layernorm(x, ln_all[1:2, :]).astype(jnp.bfloat16)
    qc = jnp.dot(h2, ca_q_ref[0],
                 preferred_element_type=jnp.float32).astype(jnp.bfloat16)   # (N, E)
    kvc = jnp.dot(mem_b, ca_kv_ref[0],
                  preferred_element_type=jnp.float32).astype(jnp.bfloat16)  # (N, 2E)
    kc, vc = kvc[:, :E], kvc[:, E:]
    x = x + attention(qc, kc, vc, ca_out_ref[0])

    # ---- feedforward (pre-LN): relu(h @ W1^T) @ W2^T ----
    h3 = _layernorm(x, ln_all[2:3, :]).astype(jnp.bfloat16)
    ff = jnp.dot(h3, ff1_ref[0], preferred_element_type=jnp.float32)        # (N, 4E)
    ff = jnp.maximum(ff, 0.0).astype(jnp.bfloat16)
    x = x + jnp.dot(ff, ff2_ref[0], preferred_element_type=jnp.float32)

    x_scr[...] = x

    # ---- projection head + mean cross-entropy, only on the last layer iteration ----
    @pl.when(layer == n_layers - 1)
    def _():
        logits = jnp.dot(x.astype(jnp.bfloat16), proj_w_ref[...],
                         preferred_element_type=jnp.float32) + proj_b_ref[...]   # (N, V)
        logits_ref[...] = logits
        V = logits.shape[-1]
        m = jnp.max(logits, axis=-1, keepdims=True)
        lse = jnp.log(jnp.sum(jnp.exp(logits - m), axis=-1, keepdims=True)) + m  # (N,1)
        col_ids = jax.lax.broadcasted_iota(jnp.int32, (N, V), 1)
        onehot = (col_ids == tgt_ref[...]).astype(jnp.float32)                   # (N,V)
        picked = jnp.sum(logits * onehot, axis=-1, keepdims=True)                # (N,1)
        nll = lse - picked
        loss_ref[...] = jnp.broadcast_to(jnp.sum(nll) * (1.0 / N), (1, 1))


# --------------------------------- full model --------------------------------

def init_params(key, size_context, num_embeddings, size_embedding, num_heads, num_blocks):
    # torch-layout parameters (Linear weights stored as (out_features, in_features)).
    E, V = size_embedding, num_embeddings
    scalar = 4
    ks = jax.random.split(key, 4 + 6 * num_blocks)
    std = 0.02
    params = {
        "tok_emb": jax.random.normal(ks[0], (V, E), jnp.float32) * std,
        "pos_emb": jax.random.normal(ks[1], (size_context, E), jnp.float32) * std,
        "proj_w": jax.random.normal(ks[2], (V, E), jnp.float32) * std,
        "proj_b": jnp.zeros((1, V), jnp.float32),
        "layers": [],
    }
    for l in range(num_blocks):
        kk = jax.random.split(ks[4 + l], 6)
        params["layers"].append({
            "ln1": jnp.ones((1, E), jnp.float32),
            "ln2": jnp.ones((1, E), jnp.float32),
            "ln3": jnp.ones((1, E), jnp.float32),
            "sa_in": jax.random.normal(kk[0], (3 * E, E), jnp.float32) * std,
            "sa_out": jax.random.normal(kk[1], (E, E), jnp.float32) * std,
            "ca_in": jax.random.normal(kk[2], (3 * E, E), jnp.float32) * std,
            "ca_out": jax.random.normal(kk[3], (E, E), jnp.float32) * std,
            "ff1": jax.random.normal(kk[4], (scalar * E, E), jnp.float32) * std,
            "ff2": jax.random.normal(kk[5], (E, scalar * E), jnp.float32) * std,
        })
    return params


def model_forward(params, tokens, targets, *, num_heads):
    B, T = tokens.shape
    E = params["tok_emb"].shape[1]
    V = params["proj_w"].shape[0]
    L = len(params["layers"])
    N = B * T

    # ------------- host-side glue (gathers + weight packing, folded by jit) -------------
    tok = jnp.take(params["tok_emb"], tokens, axis=0)                # (B, T, E)
    pos = params["pos_emb"][:T][None, :, :]                          # (1, T, E)
    x0 = (tok + pos).astype(jnp.float32).reshape(N, E)               # lane-dense slab

    def stack(fn):
        return jnp.stack([fn(layer) for layer in params["layers"]], axis=0)

    bf16 = jnp.bfloat16
    ln_w     = stack(lambda l: jnp.stack([l["ln1"][0], l["ln2"][0], l["ln3"][0]], 0))  # (L,3,E) f32
    sa_qkv_t = stack(lambda l: l["sa_in"].T).astype(bf16)            # (L, E, 3E)
    sa_out_t = stack(lambda l: l["sa_out"].T).astype(bf16)           # (L, E, E)
    ca_q_t   = stack(lambda l: l["ca_in"][:E].T).astype(bf16)        # (L, E, E)
    ca_kv_t  = stack(lambda l: l["ca_in"][E:].T).astype(bf16)        # (L, E, 2E)
    ca_out_t = stack(lambda l: l["ca_out"].T).astype(bf16)           # (L, E, E)
    ff1_t    = stack(lambda l: l["ff1"].T).astype(bf16)              # (L, E, 4E)
    ff2_t    = stack(lambda l: l["ff2"].T).astype(bf16)              # (L, 4E, E)
    proj_w_t = params["proj_w"].T.astype(bf16)                       # (E, V)
    proj_b   = params["proj_b"].astype(jnp.float32)                  # (1, V)
    tgt      = targets.reshape(N, 1).astype(jnp.int32)               # (N, 1)

    def stacked_spec(arr):
        return pl.BlockSpec((1,) + arr.shape[1:], lambda l: (l, 0, 0))

    def full2_spec(arr):
        return pl.BlockSpec(arr.shape, lambda l: (0, 0))

    kernel = functools.partial(_fused_forward_kernel, B, T, num_heads)

    logits, loss = pl.pallas_call(
        kernel,
        out_shape=(jax.ShapeDtypeStruct((N, V), jnp.float32),
                   jax.ShapeDtypeStruct((1, 1), jnp.float32)),
        grid=(L,),                                    # stream stacked weights per layer
        in_specs=[full2_spec(x0),
                  stacked_spec(ln_w),
                  stacked_spec(sa_qkv_t), stacked_spec(sa_out_t),
                  stacked_spec(ca_q_t), stacked_spec(ca_kv_t), stacked_spec(ca_out_t),
                  stacked_spec(ff1_t), stacked_spec(ff2_t),
                  full2_spec(proj_w_t), full2_spec(proj_b), full2_spec(tgt)],
        out_specs=(pl.BlockSpec((N, V), lambda l: (0, 0)),
                   pl.BlockSpec((1, 1), lambda l: (0, 0))),
        scratch_shapes=[pltpu.VMEM((N, E), jnp.float32)],            # resident residual stream
        compiler_params=pltpu.CompilerParams(
            dimension_semantics=("arbitrary",)),                     # layer axis is sequential
    )(x0, ln_w, sa_qkv_t, sa_out_t, ca_q_t, ca_kv_t, ca_out_t,
      ff1_t, ff2_t, proj_w_t, proj_b, tgt)

    return logits, loss[0, 0]


# ------------------------------------ main ------------------------------------

if __name__ == "__main__":
    size_context = 8       # T
    num_embeddings = 16    # vocab V
    size_embedding = 32    # E
    num_heads = 4
    num_blocks = 2
    B = 2

    key = jax.random.PRNGKey(0)
    k_params, k_in, k_tgt = jax.random.split(key, 3)

    params = init_params(k_params, size_context, num_embeddings,
                         size_embedding, num_heads, num_blocks)

    tokens = jax.random.randint(k_in, (B, size_context), 0, num_embeddings, dtype=jnp.int32)
    targets = jax.random.randint(k_tgt, (B, size_context), 0, num_embeddings, dtype=jnp.int32)

    fwd = jax.jit(functools.partial(model_forward, num_heads=num_heads))
    logits, loss = fwd(params, tokens, targets)
    jax.block_until_ready((logits, loss))

    assert logits.shape == (B * size_context, num_embeddings)
    assert loss.shape == ()
    assert bool(jnp.isfinite(loss))
    print("KERNEL_OK")
</pallas_src>

<mosaic_0001>
module attributes {stable_mosaic.version = 11 : i64} {
  func.func @_fused_forward_kernel(%arg0: i32, %arg1: memref<16x32xf32, #tpu.memory_space<vmem>>, %arg2: memref<1x3x32xf32, #tpu.memory_space<vmem>>, %arg3: memref<1x32x96xbf16, #tpu.memory_space<vmem>>, %arg4: memref<1x32x32xbf16, #tpu.memory_space<vmem>>, %arg5: memref<1x32x32xbf16, #tpu.memory_space<vmem>>, %arg6: memref<1x32x64xbf16, #tpu.memory_space<vmem>>, %arg7: memref<1x32x32xbf16, #tpu.memory_space<vmem>>, %arg8: memref<1x32x128xbf16, #tpu.memory_space<vmem>>, %arg9: memref<1x128x32xbf16, #tpu.memory_space<vmem>>, %arg10: memref<32x16xbf16, #tpu.memory_space<vmem>>, %arg11: memref<1x16xf32, #tpu.memory_space<vmem>>, %arg12: memref<16x1xi32, #tpu.memory_space<vmem>>, %arg13: memref<16x16xf32, #tpu.memory_space<vmem>>, %arg14: memref<1x1xf32, #tpu.memory_space<vmem>>, %arg15: memref<16x32xf32, #tpu.memory_space<vmem>>) attributes {dimension_semantics = [#tpu.dimension_semantics<arbitrary>], iteration_bounds = array<i64: 2>, scalar_prefetch = 0 : i64, scratch_operands = 1 : i64, tpu.core_type = #tpu.core_type<tc>, window_params = [{pipeline_mode = #tpu.pipeline_mode<synchronous>, transform_indices = @transform_0, window_bounds = array<i64: 16, 32>}, {transform_indices = @transform_1, window_bounds = array<i64: 1, 3, 32>}, {transform_indices = @transform_2, window_bounds = array<i64: 1, 32, 96>}, {transform_indices = @transform_3, window_bounds = array<i64: 1, 32, 32>}, {transform_indices = @transform_4, window_bounds = array<i64: 1, 32, 32>}, {transform_indices = @transform_5, window_bounds = array<i64: 1, 32, 64>}, {transform_indices = @transform_6, window_bounds = array<i64: 1, 32, 32>}, {transform_indices = @transform_7, window_bounds = array<i64: 1, 32, 128>}, {transform_indices = @transform_8, window_bounds = array<i64: 1, 128, 32>}, {pipeline_mode = #tpu.pipeline_mode<synchronous>, transform_indices = @transform_9, window_bounds = array<i64: 32, 16>}, {pipeline_mode = #tpu.pipeline_mode<synchronous>, transform_indices = @transform_10, window_bounds = array<i64: 1, 16>}, {pipeline_mode = #tpu.pipeline_mode<synchronous>, transform_indices = @transform_11, window_bounds = array<i64: 16, 1>}, {pipeline_mode = #tpu.pipeline_mode<synchronous>, transform_indices = @transform_12, window_bounds = array<i64: 16, 16>}, {pipeline_mode = #tpu.pipeline_mode<synchronous>, transform_indices = @transform_13, window_bounds = array<i64: 1, 1>}]} {
    %c0_i32 = arith.constant 0 : i32
    %0 = arith.cmpi eq, %arg0, %c0_i32 : i32
    %1 = arith.extui %0 : i1 to i32
    %c0_i32_0 = arith.constant 0 : i32
    %2 = arith.cmpi ne, %1, %c0_i32_0 : i32
    scf.if %2 {
      %c0_103 = arith.constant 0 : index
      %c0_104 = arith.constant 0 : index
      %351 = vector.load %arg1[%c0_103, %c0_104] : memref<16x32xf32, #tpu.memory_space<vmem>>, vector<16x32xf32>
      %c0_105 = arith.constant 0 : index
      %c0_106 = arith.constant 0 : index
      %352 = vector.load %arg15[%c0_105, %c0_106] : memref<16x32xf32, #tpu.memory_space<vmem>>, vector<16x32xf32>
      tpu.vector_store %arg15[%c0_105, %c0_106], %351 {strides = array<i32>} : memref<16x32xf32, #tpu.memory_space<vmem>>, vector<16x32xf32>,
    } else {
    }
    %3 = tpu.iota {dimensions = array<i32: 0>} : vector<8x8xi32>
    %4 = tpu.iota {dimensions = array<i32: 1>} : vector<8x8xi32>
    %5 = arith.cmpi sge, %3, %4 : vector<8x8xi32>
    %cst = arith.constant 0.000000e+00 : f32
    %cst_1 = arith.constant -1.000000e+30 : f32
    %6 = vector.broadcast %cst : f32 to vector<8x8xf32>
    %7 = vector.broadcast %cst_1 : f32 to vector<8x8xf32>
    %8 = arith.select %5, %6, %7 : vector<8x8xi1>, vector<8x8xf32>
    %c0 = arith.constant 0 : index
    %c0_2 = arith.constant 0 : index
    %9 = vector.load %arg15[%c0, %c0_2] : memref<16x32xf32, #tpu.memory_space<vmem>>, vector<16x32xf32>
    %c0_3 = arith.constant 0 : index
    %c0_4 = arith.constant 0 : index
    %10 = vector.load %arg1[%c0_3, %c0_4] : memref<16x32xf32, #tpu.memory_space<vmem>>, vector<16x32xf32>
    %11 = arith.truncf %10 : vector<16x32xf32> to vector<16x32xbf16>
    %c0_5 = arith.constant 0 : index
    %c0_6 = arith.constant 0 : index
    %c0_7 = arith.constant 0 : index
    %12 = vector.load %arg2[%c0_5, %c0_6, %c0_7] : memref<1x3x32xf32, #tpu.memory_space<vmem>>, vector<1x3x32xf32>
    %13 = vector.shape_cast %12 : vector<1x3x32xf32> to vector<3x32xf32>
    %14 = vector.extract_strided_slice %13 {offsets = [0, 0], sizes = [1, 32], strides = [1, 1]} : vector<3x32xf32> to vector<1x32xf32>
    %cst_8 = arith.constant dense<0.000000e+00> : vector<16xf32>
    %15 = vector.multi_reduction <add>, %9, %cst_8 [1] : vector<16x32xf32> to vector<16xf32>
    %16 = vector.shape_cast %15 : vector<16xf32> to vector<16x1xf32>
    %cst_9 = arith.constant 3.200000e+01 : f32
    %17 = vector.broadcast %cst_9 : f32 to vector<16x1xf32>
    %18 = arith.divf %16, %17 : vector<16x1xf32>
    %19 = vector.broadcast %18 : vector<16x1xf32> to vector<16x32xf32>
    %20 = arith.subf %9, %19 : vector<16x32xf32>
    %21 = arith.mulf %20, %20 : vector<16x32xf32>
    %cst_10 = arith.constant dense<0.000000e+00> : vector<16xf32>
    %22 = vector.multi_reduction <add>, %21, %cst_10 [1] : vector<16x32xf32> to vector<16xf32>
    %23 = vector.shape_cast %22 : vector<16xf32> to vector<16x1xf32>
    %cst_11 = arith.constant 3.200000e+01 : f32
    %24 = vector.broadcast %cst_11 : f32 to vector<16x1xf32>
    %25 = arith.divf %23, %24 : vector<16x1xf32>
    %26 = vector.broadcast %18 : vector<16x1xf32> to vector<16x32xf32>
    %27 = arith.subf %9, %26 : vector<16x32xf32>
    %cst_12 = arith.constant 9.99999974E-6 : f32
    %28 = vector.broadcast %cst_12 : f32 to vector<16x1xf32>
    %29 = arith.addf %25, %28 : vector<16x1xf32>
    %30 = math.rsqrt %29 : vector<16x1xf32>
    %31 = vector.broadcast %30 : vector<16x1xf32> to vector<16x32xf32>
    %32 = arith.mulf %27, %31 : vector<16x32xf32>
    %33 = vector.broadcast %14 : vector<1x32xf32> to vector<16x32xf32>
    %34 = arith.mulf %32, %33 : vector<16x32xf32>
    %35 = arith.truncf %34 : vector<16x32xf32> to vector<16x32xbf16>
    %c0_13 = arith.constant 0 : index
    %c0_14 = arith.constant 0 : index
    %c0_15 = arith.constant 0 : index
    %36 = vector.load %arg3[%c0_13, %c0_14, %c0_15] : memref<1x32x96xbf16, #tpu.memory_space<vmem>>, vector<1x32x96xbf16>
    %37 = vector.shape_cast %36 : vector<1x32x96xbf16> to vector<32x96xbf16>
    %cst_16 = arith.constant dense<0.000000e+00> : vector<16x96xf32>
    %38 = tpu.matmul %35, %37, %cst_16 {dimension_numbers = #tpu.dot_dimension_numbers<[1], [0], [0], [1], [0, 0, 1, 1], [], []>} : vector<16x32xbf16>, vector<32x96xbf16>, vector<16x96xf32> -> vector<16x96xf32>
    %39 = arith.truncf %38 : vector<16x96xf32> to vector<16x96xbf16>
    %40 = vector.extract_strided_slice %39 {offsets = [0, 0], sizes = [16, 32], strides = [1, 1]} : vector<16x96xbf16> to vector<16x32xbf16>
    %41 = vector.extract_strided_slice %39 {offsets = [0, 32], sizes = [16, 32], strides = [1, 1]} : vector<16x96xbf16> to vector<16x32xbf16>
    %42 = vector.extract_strided_slice %39 {offsets = [0, 64], sizes = [16, 32], strides = [1, 1]} : vector<16x96xbf16> to vector<16x32xbf16>
    %c0_17 = arith.constant 0 : index
    %c0_18 = arith.constant 0 : index
    %c0_19 = arith.constant 0 : index
    %43 = vector.load %arg4[%c0_17, %c0_18, %c0_19] : memref<1x32x32xbf16, #tpu.memory_space<vmem>>, vector<1x32x32xbf16>
    %44 = vector.shape_cast %43 : vector<1x32x32xbf16> to vector<32x32xbf16>
    %cst_20 = arith.constant 0.000000e+00 : f32
    %45 = vector.broadcast %cst_20 : f32 to vector<16x32xf32>
    %46 = vector.extract_strided_slice %40 {offsets = [0, 0], sizes = [16, 8], strides = [1, 1]} : vector<16x32xbf16> to vector<16x8xbf16>
    %47 = vector.shape_cast %46 : vector<16x8xbf16> to vector<2x8x8xbf16>
    %48 = vector.extract_strided_slice %41 {offsets = [0, 0], sizes = [16, 8], strides = [1, 1]} : vector<16x32xbf16> to vector<16x8xbf16>
    %49 = vector.shape_cast %48 : vector<16x8xbf16> to vector<2x8x8xbf16>
    %50 = vector.extract_strided_slice %42 {offsets = [0, 0], sizes = [16, 8], strides = [1, 1]} : vector<16x32xbf16> to vector<16x8xbf16>
    %51 = vector.shape_cast %50 : vector<16x8xbf16> to vector<2x8x8xbf16>
    "tpu.trace_start"() <{level = 10 : i32, message = "btd,bsd->bts"}> : () -> ()
    %cst_21 = arith.constant dense<0.000000e+00> : vector<2x8x8xf32>
    %52 = tpu.matmul %47, %49, %cst_21 {dimension_numbers = #tpu.dot_dimension_numbers<[2], [2], [1], [1], [0, 0, 0, 1, 1, 1], [0], [0]>} : vector<2x8x8xbf16>, vector<2x8x8xbf16>, vector<2x8x8xf32> -> vector<2x8x8xf32>
    "tpu.trace_stop"() : () -> ()
    %cst_22 = arith.constant 0.353553385 : f32
    %53 = vector.broadcast %cst_22 : f32 to vector<2x8x8xf32>
    %54 = arith.mulf %52, %53 : vector<2x8x8xf32>
    %55 = vector.shape_cast %8 : vector<8x8xf32> to vector<1x8x8xf32>
    %56 = vector.broadcast %55 : vector<1x8x8xf32> to vector<2x8x8xf32>
    %57 = arith.addf %54, %56 : vector<2x8x8xf32>
    %cst_23 = arith.constant dense<0xFF800000> : vector<2x8xf32>
    %58 = vector.multi_reduction <maximumf>, %57, %cst_23 [2] : vector<2x8x8xf32> to vector<2x8xf32>
    %59 = vector.shape_cast %58 : vector<2x8xf32> to vector<2x8x1xf32>
    %60 = vector.broadcast %59 : vector<2x8x1xf32> to vector<2x8x8xf32>
    %61 = arith.subf %57, %60 : vector<2x8x8xf32>
    %62 = math.exp %61 : vector<2x8x8xf32>
    %cst_24 = arith.constant dense<0.000000e+00> : vector<2x8xf32>
    %63 = vector.multi_reduction <add>, %62, %cst_24 [2] : vector<2x8x8xf32> to vector<2x8xf32>
    %64 = vector.shape_cast %63 : vector<2x8xf32> to vector<2x8x1xf32>
    %65 = tpu.reciprocal %64 {approx = true} : vector<2x8x1xf32> -> vector<2x8x1xf32>
    %66 = vector.broadcast %65 : vector<2x8x1xf32> to vector<2x8x8xf32>
    %67 = arith.mulf %62, %66 : vector<2x8x8xf32>
    %68 = arith.truncf %67 : vector<2x8x8xf32> to vector<2x8x8xbf16>
    "tpu.trace_start"() <{level = 10 : i32, message = "bts,bsd->btd"}> : () -> ()
    %cst_25 = arith.constant dense<0.000000e+00> : vector<2x8x8xf32>
    %69 = tpu.matmul %68, %51, %cst_25 {dimension_numbers = #tpu.dot_dimension_numbers<[2], [1], [1], [2], [0, 0, 0, 1, 1, 2], [0], [0]>} : vector<2x8x8xbf16>, vector<2x8x8xbf16>, vector<2x8x8xf32> -> vector<2x8x8xf32>
    "tpu.trace_stop"() : () -> ()
    %70 = vector.shape_cast %69 : vector<2x8x8xf32> to vector<16x8xf32>
    %71 = arith.truncf %70 : vector<16x8xf32> to vector<16x8xbf16>
    %72 = vector.extract_strided_slice %44 {offsets = [0, 0], sizes = [8, 32], strides = [1, 1]} : vector<32x32xbf16> to vector<8x32xbf16>
    %cst_26 = arith.constant dense<0.000000e+00> : vector<16x32xf32>
    %73 = tpu.matmul %71, %72, %cst_26 {dimension_numbers = #tpu.dot_dimension_numbers<[1], [0], [0], [1], [0, 0, 1, 1], [], []>} : vector<16x8xbf16>, vector<8x32xbf16>, vector<16x32xf32> -> vector<16x32xf32>
    %74 = arith.addf %45, %73 : vector<16x32xf32>
    %75 = vector.extract_strided_slice %40 {offsets = [0, 8], sizes = [16, 8], strides = [1, 1]} : vector<16x32xbf16> to vector<16x8xbf16>
    %76 = vector.shape_cast %75 : vector<16x8xbf16> to vector<2x8x8xbf16>
    %77 = vector.extract_strided_slice %41 {offsets = [0, 8], sizes = [16, 8], strides = [1, 1]} : vector<16x32xbf16> to vector<16x8xbf16>
    %78 = vector.shape_cast %77 : vector<16x8xbf16> to vector<2x8x8xbf16>
    %79 = vector.extract_strided_slice %42 {offsets = [0, 8], sizes = [16, 8], strides = [1, 1]} : vector<16x32xbf16> to vector<16x8xbf16>
    %80 = vector.shape_cast %79 : vector<16x8xbf16> to vector<2x8x8xbf16>
    "tpu.trace_start"() <{level = 10 : i32, message = "btd,bsd->bts"}> : () -> ()
    %cst_27 = arith.constant dense<0.000000e+00> : vector<2x8x8xf32>
    %81 = tpu.matmul %76, %78, %cst_27 {dimension_numbers = #tpu.dot_dimension_numbers<[2], [2], [1], [1], [0, 0, 0, 1, 1, 1], [0], [0]>} : vector<2x8x8xbf16>, vector<2x8x8xbf16>, vector<2x8x8xf32> -> vector<2x8x8xf32>
    "tpu.trace_stop"() : () -> ()
    %cst_28 = arith.constant 0.353553385 : f32
    %82 = vector.broadcast %cst_28 : f32 to vector<2x8x8xf32>
    %83 = arith.mulf %81, %82 : vector<2x8x8xf32>
    %84 = vector.shape_cast %8 : vector<8x8xf32> to vector<1x8x8xf32>
    %85 = vector.broadcast %84 : vector<1x8x8xf32> to vector<2x8x8xf32>
    %86 = arith.addf %83, %85 : vector<2x8x8xf32>
    %cst_29 = arith.constant dense<0xFF800000> : vector<2x8xf32>
    %87 = vector.multi_reduction <maximumf>, %86, %cst_29 [2] : vector<2x8x8xf32> to vector<2x8xf32>
    %88 = vector.shape_cast %87 : vector<2x8xf32> to vector<2x8x1xf32>
    %89 = vector.broadcast %88 : vector<2x8x1xf32> to vector<2x8x8xf32>
    %90 = arith.subf %86, %89 : vector<2x8x8xf32>
    %91 = math.exp %90 : vector<2x8x8xf32>
    %cst_30 = arith.constant dense<0.000000e+00> : vector<2x8xf32>
    %92 = vector.multi_reduction <add>, %91, %cst_30 [2] : vector<2x8x8xf32> to vector<2x8xf32>
    %93 = vector.shape_cast %92 : vector<2x8xf32> to vector<2x8x1xf32>
    %94 = tpu.reciprocal %93 {approx = true} : vector<2x8x1xf32> -> vector<2x8x1xf32>
    %95 = vector.broadcast %94 : vector<2x8x1xf32> to vector<2x8x8xf32>
    %96 = arith.mulf %91, %95 : vector<2x8x8xf32>
    %97 = arith.truncf %96 : vector<2x8x8xf32> to vector<2x8x8xbf16>
    "tpu.trace_start"() <{level = 10 : i32, message = "bts,bsd->btd"}> : () -> ()
    %cst_31 = arith.constant dense<0.000000e+00> : vector<2x8x8xf32>
    %98 = tpu.matmul %97, %80, %cst_31 {dimension_numbers = #tpu.dot_dimension_numbers<[2], [1], [1], [2], [0, 0, 0, 1, 1, 2], [0], [0]>} : vector<2x8x8xbf16>, vector<2x8x8xbf16>, vector<2x8x8xf32> -> vector<2x8x8xf32>
    "tpu.trace_stop"() : () -> ()
    %99 = vector.shape_cast %98 : vector<2x8x8xf32> to vector<16x8xf32>
    %100 = arith.truncf %99 : vector<16x8xf32> to vector<16x8xbf16>
    %101 = vector.extract_strided_slice %44 {offsets = [8, 0], sizes = [8, 32], strides = [1, 1]} : vector<32x32xbf16> to vector<8x32xbf16>
    %cst_32 = arith.constant dense<0.000000e+00> : vector<16x32xf32>
    %102 = tpu.matmul %100, %101, %cst_32 {dimension_numbers = #tpu.dot_dimension_numbers<[1], [0], [0], [1], [0, 0, 1, 1], [], []>} : vector<16x8xbf16>, vector<8x32xbf16>, vector<16x32xf32> -> vector<16x32xf32>
    %103 = arith.addf %74, %102 : vector<16x32xf32>
    %104 = vector.extract_strided_slice %40 {offsets = [0, 16], sizes = [16, 8], strides = [1, 1]} : vector<16x32xbf16> to vector<16x8xbf16>
    %105 = vector.shape_cast %104 : vector<16x8xbf16> to vector<2x8x8xbf16>
    %106 = vector.extract_strided_slice %41 {offsets = [0, 16], sizes = [16, 8], strides = [1, 1]} : vector<16x32xbf16> to vector<16x8xbf16>
    %107 = vector.shape_cast %106 : vector<16x8xbf16> to vector<2x8x8xbf16>
    %108 = vector.extract_strided_slice %42 {offsets = [0, 16], sizes = [16, 8], strides = [1, 1]} : vector<16x32xbf16> to vector<16x8xbf16>
    %109 = vector.shape_cast %108 : vector<16x8xbf16> to vector<2x8x8xbf16>
    "tpu.trace_start"() <{level = 10 : i32, message = "btd,bsd->bts"}> : () -> ()
    %cst_33 = arith.constant dense<0.000000e+00> : vector<2x8x8xf32>
    %110 = tpu.matmul %105, %107, %cst_33 {dimension_numbers = #tpu.dot_dimension_numbers<[2], [2], [1], [1], [0, 0, 0, 1, 1, 1], [0], [0]>} : vector<2x8x8xbf16>, vector<2x8x8xbf16>, vector<2x8x8xf32> -> vector<2x8x8xf32>
    "tpu.trace_stop"() : () -> ()
    %cst_34 = arith.constant 0.353553385 : f32
    %111 = vector.broadcast %cst_34 : f32 to vector<2x8x8xf32>
    %112 = arith.mulf %110, %111 : vector<2x8x8xf32>
    %113 = vector.shape_cast %8 : vector<8x8xf32> to vector<1x8x8xf32>
    %114 = vector.broadcast %113 : vector<1x8x8xf32> to vector<2x8x8xf32>
    %115 = arith.addf %112, %114 : vector<2x8x8xf32>
    %cst_35 = arith.constant dense<0xFF800000> : vector<2x8xf32>
    %116 = vector.multi_reduction <maximumf>, %115, %cst_35 [2] : vector<2x8x8xf32> to vector<2x8xf32>
    %117 = vector.shape_cast %116 : vector<2x8xf32> to vector<2x8x1xf32>
    %118 = vector.broadcast %117 : vector<2x8x1xf32> to vector<2x8x8xf32>
    %119 = arith.subf %115, %118 : vector<2x8x8xf32>
    %120 = math.exp %119 : vector<2x8x8xf32>
    %cst_36 = arith.constant dense<0.000000e+00> : vector<2x8xf32>
    %121 = vector.multi_reduction <add>, %120, %cst_36 [2] : vector<2x8x8xf32> to vector<2x8xf32>
    %122 = vector.shape_cast %121 : vector<2x8xf32> to vector<2x8x1xf32>
    %123 = tpu.reciprocal %122 {approx = true} : vector<2x8x1xf32> -> vector<2x8x1xf32>
    %124 = vector.broadcast %123 : vector<2x8x1xf32> to vector<2x8x8xf32>
    %125 = arith.mulf %120, %124 : vector<2x8x8xf32>
    %126 = arith.truncf %125 : vector<2x8x8xf32> to vector<2x8x8xbf16>
    "tpu.trace_start"() <{level = 10 : i32, message = "bts,bsd->btd"}> : () -> ()
    %cst_37 = arith.constant dense<0.000000e+00> : vector<2x8x8xf32>
    %127 = tpu.matmul %126, %109, %cst_37 {dimension_numbers = #tpu.dot_dimension_numbers<[2], [1], [1], [2], [0, 0, 0, 1, 1, 2], [0], [0]>} : vector<2x8x8xbf16>, vector<2x8x8xbf16>, vector<2x8x8xf32> -> vector<2x8x8xf32>
    "tpu.trace_stop"() : () -> ()
    %128 = vector.shape_cast %127 : vector<2x8x8xf32> to vector<16x8xf32>
    %129 = arith.truncf %128 : vector<16x8xf32> to vector<16x8xbf16>
    %130 = vector.extract_strided_slice %44 {offsets = [16, 0], sizes = [8, 32], strides = [1, 1]} : vector<32x32xbf16> to vector<8x32xbf16>
    %cst_38 = arith.constant dense<0.000000e+00> : vector<16x32xf32>
    %131 = tpu.matmul %129, %130, %cst_38 {dimension_numbers = #tpu.dot_dimension_numbers<[1], [0], [0], [1], [0, 0, 1, 1], [], []>} : vector<16x8xbf16>, vector<8x32xbf16>, vector<16x32xf32> -> vector<16x32xf32>
    %132 = arith.addf %103, %131 : vector<16x32xf32>
    %133 = vector.extract_strided_slice %40 {offsets = [0, 24], sizes = [16, 8], strides = [1, 1]} : vector<16x32xbf16> to vector<16x8xbf16>
    %134 = vector.shape_cast %133 : vector<16x8xbf16> to vector<2x8x8xbf16>
    %135 = vector.extract_strided_slice %41 {offsets = [0, 24], sizes = [16, 8], strides = [1, 1]} : vector<16x32xbf16> to vector<16x8xbf16>
    %136 = vector.shape_cast %135 : vector<16x8xbf16> to vector<2x8x8xbf16>
    %137 = vector.extract_strided_slice %42 {offsets = [0, 24], sizes = [16, 8], strides = [1, 1]} : vector<16x32xbf16> to vector<16x8xbf16>
    %138 = vector.shape_cast %137 : vector<16x8xbf16> to vector<2x8x8xbf16>
    "tpu.trace_start"() <{level = 10 : i32, message = "btd,bsd->bts"}> : () -> ()
    %cst_39 = arith.constant dense<0.000000e+00> : vector<2x8x8xf32>
    %139 = tpu.matmul %134, %136, %cst_39 {dimension_numbers = #tpu.dot_dimension_numbers<[2], [2], [1], [1], [0, 0, 0, 1, 1, 1], [0], [0]>} : vector<2x8x8xbf16>, vector<2x8x8xbf16>, vector<2x8x8xf32> -> vector<2x8x8xf32>
    "tpu.trace_stop"() : () -> ()
    %cst_40 = arith.constant 0.353553385 : f32
    %140 = vector.broadcast %cst_40 : f32 to vector<2x8x8xf32>
    %141 = arith.mulf %139, %140 : vector<2x8x8xf32>
    %142 = vector.shape_cast %8 : vector<8x8xf32> to vector<1x8x8xf32>
    %143 = vector.broadcast %142 : vector<1x8x8xf32> to vector<2x8x8xf32>
    %144 = arith.addf %141, %143 : vector<2x8x8xf32>
    %cst_41 = arith.constant dense<0xFF800000> : vector<2x8xf32>
    %145 = vector.multi_reduction <maximumf>, %144, %cst_41 [2] : vector<2x8x8xf32> to vector<2x8xf32>
    %146 = vector.shape_cast %145 : vector<2x8xf32> to vector<2x8x1xf32>
    %147 = vector.broadcast %146 : vector<2x8x1xf32> to vector<2x8x8xf32>
    %148 = arith.subf %144, %147 : vector<2x8x8xf32>
    %149 = math.exp %148 : vector<2x8x8xf32>
    %cst_42 = arith.constant dense<0.000000e+00> : vector<2x8xf32>
    %150 = vector.multi_reduction <add>, %149, %cst_42 [2] : vector<2x8x8xf32> to vector<2x8xf32>
    %151 = vector.shape_cast %150 : vector<2x8xf32> to vector<2x8x1xf32>
    %152 = tpu.reciprocal %151 {approx = true} : vector<2x8x1xf32> -> vector<2x8x1xf32>
    %153 = vector.broadcast %152 : vector<2x8x1xf32> to vector<2x8x8xf32>
    %154 = arith.mulf %149, %153 : vector<2x8x8xf32>
    %155 = arith.truncf %154 : vector<2x8x8xf32> to vector<2x8x8xbf16>
    "tpu.trace_start"() <{level = 10 : i32, message = "bts,bsd->btd"}> : () -> ()
    %cst_43 = arith.constant dense<0.000000e+00> : vector<2x8x8xf32>
    %156 = tpu.matmul %155, %138, %cst_43 {dimension_numbers = #tpu.dot_dimension_numbers<[2], [1], [1], [2], [0, 0, 0, 1, 1, 2], [0], [0]>} : vector<2x8x8xbf16>, vector<2x8x8xbf16>, vector<2x8x8xf32> -> vector<2x8x8xf32>
    "tpu.trace_stop"() : () -> ()
    %157 = vector.shape_cast %156 : vector<2x8x8xf32> to vector<16x8xf32>
    %158 = arith.truncf %157 : vector<16x8xf32> to vector<16x8xbf16>
    %159 = vector.extract_strided_slice %44 {offsets = [24, 0], sizes = [8, 32], strides = [1, 1]} : vector<32x32xbf16> to vector<8x32xbf16>
    %cst_44 = arith.constant dense<0.000000e+00> : vector<16x32xf32>
    %160 = tpu.matmul %158, %159, %cst_44 {dimension_numbers = #tpu.dot_dimension_numbers<[1], [0], [0], [1], [0, 0, 1, 1], [], []>} : vector<16x8xbf16>, vector<8x32xbf16>, vector<16x32xf32> -> vector<16x32xf32>
    %161 = arith.addf %132, %160 : vector<16x32xf32>
    %162 = arith.addf %9, %161 : vector<16x32xf32>
    %163 = vector.extract_strided_slice %13 {offsets = [1, 0], sizes = [1, 32], strides = [1, 1]} : vector<3x32xf32> to vector<1x32xf32>
    %cst_45 = arith.constant dense<0.000000e+00> : vector<16xf32>
    %164 = vector.multi_reduction <add>, %162, %cst_45 [1] : vector<16x32xf32> to vector<16xf32>
    %165 = vector.shape_cast %164 : vector<16xf32> to vector<16x1xf32>
    %cst_46 = arith.constant 3.200000e+01 : f32
    %166 = vector.broadcast %cst_46 : f32 to vector<16x1xf32>
    %167 = arith.divf %165, %166 : vector<16x1xf32>
    %168 = vector.broadcast %167 : vector<16x1xf32> to vector<16x32xf32>
    %169 = arith.subf %162, %168 : vector<16x32xf32>
    %170 = arith.mulf %169, %169 : vector<16x32xf32>
    %cst_47 = arith.constant dense<0.000000e+00> : vector<16xf32>
    %171 = vector.multi_reduction <add>, %170, %cst_47 [1] : vector<16x32xf32> to vector<16xf32>
    %172 = vector.shape_cast %171 : vector<16xf32> to vector<16x1xf32>
    %cst_48 = arith.constant 3.200000e+01 : f32
    %173 = vector.broadcast %cst_48 : f32 to vector<16x1xf32>
    %174 = arith.divf %172, %173 : vector<16x1xf32>
    %175 = vector.broadcast %167 : vector<16x1xf32> to vector<16x32xf32>
    %176 = arith.subf %162, %175 : vector<16x32xf32>
    %cst_49 = arith.constant 9.99999974E-6 : f32
    %177 = vector.broadcast %cst_49 : f32 to vector<16x1xf32>
    %178 = arith.addf %174, %177 : vector<16x1xf32>
    %179 = math.rsqrt %178 : vector<16x1xf32>
    %180 = vector.broadcast %179 : vector<16x1xf32> to vector<16x32xf32>
    %181 = arith.mulf %176, %180 : vector<16x32xf32>
    %182 = vector.broadcast %163 : vector<1x32xf32> to vector<16x32xf32>
    %183 = arith.mulf %181, %182 : vector<16x32xf32>
    %184 = arith.truncf %183 : vector<16x32xf32> to vector<16x32xbf16>
    %c0_50 = arith.constant 0 : index
    %c0_51 = arith.constant 0 : index
    %c0_52 = arith.constant 0 : index
    %185 = vector.load %arg5[%c0_50, %c0_51, %c0_52] : memref<1x32x32xbf16, #tpu.memory_space<vmem>>, vector<1x32x32xbf16>
    %186 = vector.shape_cast %185 : vector<1x32x32xbf16> to vector<32x32xbf16>
    %cst_53 = arith.constant dense<0.000000e+00> : vector<16x32xf32>
    %187 = tpu.matmul %184, %186, %cst_53 {dimension_numbers = #tpu.dot_dimension_numbers<[1], [0], [0], [1], [0, 0, 1, 1], [], []>} : vector<16x32xbf16>, vector<32x32xbf16>, vector<16x32xf32> -> vector<16x32xf32>
    %188 = arith.truncf %187 : vector<16x32xf32> to vector<16x32xbf16>
    %c0_54 = arith.constant 0 : index
    %c0_55 = arith.constant 0 : index
    %c0_56 = arith.constant 0 : index
    %189 = vector.load %arg6[%c0_54, %c0_55, %c0_56] : memref<1x32x64xbf16, #tpu.memory_space<vmem>>, vector<1x32x64xbf16>
    %190 = vector.shape_cast %189 : vector<1x32x64xbf16> to vector<32x64xbf16>
    %cst_57 = arith.constant dense<0.000000e+00> : vector<16x64xf32>
    %191 = tpu.matmul %11, %190, %cst_57 {dimension_numbers = #tpu.dot_dimension_numbers<[1], [0], [0], [1], [0, 0, 1, 1], [], []>} : vector<16x32xbf16>, vector<32x64xbf16>, vector<16x64xf32> -> vector<16x64xf32>
    %192 = arith.truncf %191 : vector<16x64xf32> to vector<16x64xbf16>
    %193 = vector.extract_strided_slice %192 {offsets = [0, 0], sizes = [16, 32], strides = [1, 1]} : vector<16x64xbf16> to vector<16x32xbf16>
    %194 = vector.extract_strided_slice %192 {offsets = [0, 32], sizes = [16, 32], strides = [1, 1]} : vector<16x64xbf16> to vector<16x32xbf16>
    %c0_58 = arith.constant 0 : index
    %c0_59 = arith.constant 0 : index
    %c0_60 = arith.constant 0 : index
    %195 = vector.load %arg7[%c0_58, %c0_59, %c0_60] : memref<1x32x32xbf16, #tpu.memory_space<vmem>>, vector<1x32x32xbf16>
    %196 = vector.shape_cast %195 : vector<1x32x32xbf16> to vector<32x32xbf16>
    %cst_61 = arith.constant 0.000000e+00 : f32
    %197 = vector.broadcast %cst_61 : f32 to vector<16x32xf32>
    %198 = vector.extract_strided_slice %188 {offsets = [0, 0], sizes = [16, 8], strides = [1, 1]} : vector<16x32xbf16> to vector<16x8xbf16>
    %199 = vector.shape_cast %198 : vector<16x8xbf16> to vector<2x8x8xbf16>
    %200 = vector.extract_strided_slice %193 {offsets = [0, 0], sizes = [16, 8], strides = [1, 1]} : vector<16x32xbf16> to vector<16x8xbf16>
    %201 = vector.shape_cast %200 : vector<16x8xbf16> to vector<2x8x8xbf16>
    %202 = vector.extract_strided_slice %194 {offsets = [0, 0], sizes = [16, 8], strides = [1, 1]} : vector<16x32xbf16> to vector<16x8xbf16>
    %203 = vector.shape_cast %202 : vector<16x8xbf16> to vector<2x8x8xbf16>
    "tpu.trace_start"() <{level = 10 : i32, message = "btd,bsd->bts"}> : () -> ()
    %cst_62 = arith.constant dense<0.000000e+00> : vector<2x8x8xf32>
    %204 = tpu.matmul %199, %201, %cst_62 {dimension_numbers = #tpu.dot_dimension_numbers<[2], [2], [1], [1], [0, 0, 0, 1, 1, 1], [0], [0]>} : vector<2x8x8xbf16>, vector<2x8x8xbf16>, vector<2x8x8xf32> -> vector<2x8x8xf32>
    "tpu.trace_stop"() : () -> ()
    %cst_63 = arith.constant 0.353553385 : f32
    %205 = vector.broadcast %cst_63 : f32 to vector<2x8x8xf32>
    %206 = arith.mulf %204, %205 : vector<2x8x8xf32>
    %207 = vector.shape_cast %8 : vector<8x8xf32> to vector<1x8x8xf32>
    %208 = vector.broadcast %207 : vector<1x8x8xf32> to vector<2x8x8xf32>
    %209 = arith.addf %206, %208 : vector<2x8x8xf32>
    %cst_64 = arith.constant dense<0xFF800000> : vector<2x8xf32>
    %210 = vector.multi_reduction <maximumf>, %209, %cst_64 [2] : vector<2x8x8xf32> to vector<2x8xf32>
    %211 = vector.shape_cast %210 : vector<2x8xf32> to vector<2x8x1xf32>
    %212 = vector.broadcast %211 : vector<2x8x1xf32> to vector<2x8x8xf32>
    %213 = arith.subf %209, %212 : vector<2x8x8xf32>
    %214 = math.exp %213 : vector<2x8x8xf32>
    %cst_65 = arith.constant dense<0.000000e+00> : vector<2x8xf32>
    %215 = vector.multi_reduction <add>, %214, %cst_65 [2] : vector<2x8x8xf32> to vector<2x8xf32>
    %216 = vector.shape_cast %215 : vector<2x8xf32> to vector<2x8x1xf32>
    %217 = tpu.reciprocal %216 {approx = true} : vector<2x8x1xf32> -> vector<2x8x1xf32>
    %218 = vector.broadcast %217 : vector<2x8x1xf32> to vector<2x8x8xf32>
    %219 = arith.mulf %214, %218 : vector<2x8x8xf32>
    %220 = arith.truncf %219 : vector<2x8x8xf32> to vector<2x8x8xbf16>
    "tpu.trace_start"() <{level = 10 : i32, message = "bts,bsd->btd"}> : () -> ()
    %cst_66 = arith.constant dense<0.000000e+00> : vector<2x8x8xf32>
    %221 = tpu.matmul %220, %203, %cst_66 {dimension_numbers = #tpu.dot_dimension_numbers<[2], [1], [1], [2], [0, 0, 0, 1, 1, 2], [0], [0]>} : vector<2x8x8xbf16>, vector<2x8x8xbf16>, vector<2x8x8xf32> -> vector<2x8x8xf32>
    "tpu.trace_stop"() : () -> ()
    %222 = vector.shape_cast %221 : vector<2x8x8xf32> to vector<16x8xf32>
    %223 = arith.truncf %222 : vector<16x8xf32> to vector<16x8xbf16>
    %224 = vector.extract_strided_slice %196 {offsets = [0, 0], sizes = [8, 32], strides = [1, 1]} : vector<32x32xbf16> to vector<8x32xbf16>
    %cst_67 = arith.constant dense<0.000000e+00> : vector<16x32xf32>
    %225 = tpu.matmul %223, %224, %cst_67 {dimension_numbers = #tpu.dot_dimension_numbers<[1], [0], [0], [1], [0, 0, 1, 1], [], []>} : vector<16x8xbf16>, vector<8x32xbf16>, vector<16x32xf32> -> vector<16x32xf32>
    %226 = arith.addf %197, %225 : vector<16x32xf32>
    %227 = vector.extract_strided_slice %188 {offsets = [0, 8], sizes = [16, 8], strides = [1, 1]} : vector<16x32xbf16> to vector<16x8xbf16>
    %228 = vector.shape_cast %227 : vector<16x8xbf16> to vector<2x8x8xbf16>
    %229 = vector.extract_strided_slice %193 {offsets = [0, 8], sizes = [16, 8], strides = [1, 1]} : vector<16x32xbf16> to vector<16x8xbf16>
    %230 = vector.shape_cast %229 : vector<16x8xbf16> to vector<2x8x8xbf16>
    %231 = vector.extract_strided_slice %194 {offsets = [0, 8], sizes = [16, 8], strides = [1, 1]} : vector<16x32xbf16> to vector<16x8xbf16>
    %232 = vector.shape_cast %231 : vector<16x8xbf16> to vector<2x8x8xbf16>
    "tpu.trace_start"() <{level = 10 : i32, message = "btd,bsd->bts"}> : () -> ()
    %cst_68 = arith.constant dense<0.000000e+00> : vector<2x8x8xf32>
    %233 = tpu.matmul %228, %230, %cst_68 {dimension_numbers = #tpu.dot_dimension_numbers<[2], [2], [1], [1], [0, 0, 0, 1, 1, 1], [0], [0]>} : vector<2x8x8xbf16>, vector<2x8x8xbf16>, vector<2x8x8xf32> -> vector<2x8x8xf32>
    "tpu.trace_stop"() : () -> ()
    %cst_69 = arith.constant 0.353553385 : f32
    %234 = vector.broadcast %cst_69 : f32 to vector<2x8x8xf32>
    %235 = arith.mulf %233, %234 : vector<2x8x8xf32>
    %236 = vector.shape_cast %8 : vector<8x8xf32> to vector<1x8x8xf32>
    %237 = vector.broadcast %236 : vector<1x8x8xf32> to vector<2x8x8xf32>
    %238 = arith.addf %235, %237 : vector<2x8x8xf32>
    %cst_70 = arith.constant dense<0xFF800000> : vector<2x8xf32>
    %239 = vector.multi_reduction <maximumf>, %238, %cst_70 [2] : vector<2x8x8xf32> to vector<2x8xf32>
    %240 = vector.shape_cast %239 : vector<2x8xf32> to vector<2x8x1xf32>
    %241 = vector.broadcast %240 : vector<2x8x1xf32> to vector<2x8x8xf32>
    %242 = arith.subf %238, %241 : vector<2x8x8xf32>
    %243 = math.exp %242 : vector<2x8x8xf32>
    %cst_71 = arith.constant dense<0.000000e+00> : vector<2x8xf32>
    %244 = vector.multi_reduction <add>, %243, %cst_71 [2] : vector<2x8x8xf32> to vector<2x8xf32>
    %245 = vector.shape_cast %244 : vector<2x8xf32> to vector<2x8x1xf32>
    %246 = tpu.reciprocal %245 {approx = true} : vector<2x8x1xf32> -> vector<2x8x1xf32>
    %247 = vector.broadcast %246 : vector<2x8x1xf32> to vector<2x8x8xf32>
    %248 = arith.mulf %243, %247 : vector<2x8x8xf32>
    %249 = arith.truncf %248 : vector<2x8x8xf32> to vector<2x8x8xbf16>
    "tpu.trace_start"() <{level = 10 : i32, message = "bts,bsd->btd"}> : () -> ()
    %cst_72 = arith.constant dense<0.000000e+00> : vector<2x8x8xf32>
    %250 = tpu.matmul %249, %232, %cst_72 {dimension_numbers = #tpu.dot_dimension_numbers<[2], [1], [1], [2], [0, 0, 0, 1, 1, 2], [0], [0]>} : vector<2x8x8xbf16>, vector<2x8x8xbf16>, vector<2x8x8xf32> -> vector<2x8x8xf32>
    "tpu.trace_stop"() : () -> ()
    %251 = vector.shape_cast %250 : vector<2x8x8xf32> to vector<16x8xf32>
    %252 = arith.truncf %251 : vector<16x8xf32> to vector<16x8xbf16>
    %253 = vector.extract_strided_slice %196 {offsets = [8, 0], sizes = [8, 32], strides = [1, 1]} : vector<32x32xbf16> to vector<8x32xbf16>
    %cst_73 = arith.constant dense<0.000000e+00> : vector<16x32xf32>
    %254 = tpu.matmul %252, %253, %cst_73 {dimension_numbers = #tpu.dot_dimension_numbers<[1], [0], [0], [1], [0, 0, 1, 1], [], []>} : vector<16x8xbf16>, vector<8x32xbf16>, vector<16x32xf32> -> vector<16x32xf32>
    %255 = arith.addf %226, %254 : vector<16x32xf32>
    %256 = vector.extract_strided_slice %188 {offsets = [0, 16], sizes = [16, 8], strides = [1, 1]} : vector<16x32xbf16> to vector<16x8xbf16>
    %257 = vector.shape_cast %256 : vector<16x8xbf16> to vector<2x8x8xbf16>
    %258 = vector.extract_strided_slice %193 {offsets = [0, 16], sizes = [16, 8], strides = [1, 1]} : vector<16x32xbf16> to vector<16x8xbf16>
    %259 = vector.shape_cast %258 : vector<16x8xbf16> to vector<2x8x8xbf16>
    %260 = vector.extract_strided_slice %194 {offsets = [0, 16], sizes = [16, 8], strides = [1, 1]} : vector<16x32xbf16> to vector<16x8xbf16>
    %261 = vector.shape_cast %260 : vector<16x8xbf16> to vector<2x8x8xbf16>
    "tpu.trace_start"() <{level = 10 : i32, message = "btd,bsd->bts"}> : () -> ()
    %cst_74 = arith.constant dense<0.000000e+00> : vector<2x8x8xf32>
    %262 = tpu.matmul %257, %259, %cst_74 {dimension_numbers = #tpu.dot_dimension_numbers<[2], [2], [1], [1], [0, 0, 0, 1, 1, 1], [0], [0]>} : vector<2x8x8xbf16>, vector<2x8x8xbf16>, vector<2x8x8xf32> -> vector<2x8x8xf32>
    "tpu.trace_stop"() : () -> ()
    %cst_75 = arith.constant 0.353553385 : f32
    %263 = vector.broadcast %cst_75 : f32 to vector<2x8x8xf32>
    %264 = arith.mulf %262, %263 : vector<2x8x8xf32>
    %265 = vector.shape_cast %8 : vector<8x8xf32> to vector<1x8x8xf32>
    %266 = vector.broadcast %265 : vector<1x8x8xf32> to vector<2x8x8xf32>
    %267 = arith.addf %264, %266 : vector<2x8x8xf32>
    %cst_76 = arith.constant dense<0xFF800000> : vector<2x8xf32>
    %268 = vector.multi_reduction <maximumf>, %267, %cst_76 [2] : vector<2x8x8xf32> to vector<2x8xf32>
    %269 = vector.shape_cast %268 : vector<2x8xf32> to vector<2x8x1xf32>
    %270 = vector.broadcast %269 : vector<2x8x1xf32> to vector<2x8x8xf32>
    %271 = arith.subf %267, %270 : vector<2x8x8xf32>
    %272 = math.exp %271 : vector<2x8x8xf32>
    %cst_77 = arith.constant dense<0.000000e+00> : vector<2x8xf32>
    %273 = vector.multi_reduction <add>, %272, %cst_77 [2] : vector<2x8x8xf32> to vector<2x8xf32>
    %274 = vector.shape_cast %273 : vector<2x8xf32> to vector<2x8x1xf32>
    %275 = tpu.reciprocal %274 {approx = true} : vector<2x8x1xf32> -> vector<2x8x1xf32>
    %276 = vector.broadcast %275 : vector<2x8x1xf32> to vector<2x8x8xf32>
    %277 = arith.mulf %272, %276 : vector<2x8x8xf32>
    %278 = arith.truncf %277 : vector<2x8x8xf32> to vector<2x8x8xbf16>
    "tpu.trace_start"() <{level = 10 : i32, message = "bts,bsd->btd"}> : () -> ()
    %cst_78 = arith.constant dense<0.000000e+00> : vector<2x8x8xf32>
    %279 = tpu.matmul %278, %261, %cst_78 {dimension_numbers = #tpu.dot_dimension_numbers<[2], [1], [1], [2], [0, 0, 0, 1, 1, 2], [0], [0]>} : vector<2x8x8xbf16>, vector<2x8x8xbf16>, vector<2x8x8xf32> -> vector<2x8x8xf32>
    "tpu.trace_stop"() : () -> ()
    %280 = vector.shape_cast %279 : vector<2x8x8xf32> to vector<16x8xf32>
    %281 = arith.truncf %280 : vector<16x8xf32> to vector<16x8xbf16>
    %282 = vector.extract_strided_slice %196 {offsets = [16, 0], sizes = [8, 32], strides = [1, 1]} : vector<32x32xbf16> to vector<8x32xbf16>
    %cst_79 = arith.constant dense<0.000000e+00> : vector<16x32xf32>
    %283 = tpu.matmul %281, %282, %cst_79 {dimension_numbers = #tpu.dot_dimension_numbers<[1], [0], [0], [1], [0, 0, 1, 1], [], []>} : vector<16x8xbf16>, vector<8x32xbf16>, vector<16x32xf32> -> vector<16x32xf32>
    %284 = arith.addf %255, %283 : vector<16x32xf32>
    %285 = vector.extract_strided_slice %188 {offsets = [0, 24], sizes = [16, 8], strides = [1, 1]} : vector<16x32xbf16> to vector<16x8xbf16>
    %286 = vector.shape_cast %285 : vector<16x8xbf16> to vector<2x8x8xbf16>
    %287 = vector.extract_strided_slice %193 {offsets = [0, 24], sizes = [16, 8], strides = [1, 1]} : vector<16x32xbf16> to vector<16x8xbf16>
    %288 = vector.shape_cast %287 : vector<16x8xbf16> to vector<2x8x8xbf16>
    %289 = vector.extract_strided_slice %194 {offsets = [0, 24], sizes = [16, 8], strides = [1, 1]} : vector<16x32xbf16> to vector<16x8xbf16>
    %290 = vector.shape_cast %289 : vector<16x8xbf16> to vector<2x8x8xbf16>
    "tpu.trace_start"() <{level = 10 : i32, message = "btd,bsd->bts"}> : () -> ()
    %cst_80 = arith.constant dense<0.000000e+00> : vector<2x8x8xf32>
    %291 = tpu.matmul %286, %288, %cst_80 {dimension_numbers = #tpu.dot_dimension_numbers<[2], [2], [1], [1], [0, 0, 0, 1, 1, 1], [0], [0]>} : vector<2x8x8xbf16>, vector<2x8x8xbf16>, vector<2x8x8xf32> -> vector<2x8x8xf32>
    "tpu.trace_stop"() : () -> ()
    %cst_81 = arith.constant 0.353553385 : f32
    %292 = vector.broadcast %cst_81 : f32 to vector<2x8x8xf32>
    %293 = arith.mulf %291, %292 : vector<2x8x8xf32>
    %294 = vector.shape_cast %8 : vector<8x8xf32> to vector<1x8x8xf32>
    %295 = vector.broadcast %294 : vector<1x8x8xf32> to vector<2x8x8xf32>
    %296 = arith.addf %293, %295 : vector<2x8x8xf32>
    %cst_82 = arith.constant dense<0xFF800000> : vector<2x8xf32>
    %297 = vector.multi_reduction <maximumf>, %296, %cst_82 [2] : vector<2x8x8xf32> to vector<2x8xf32>
    %298 = vector.shape_cast %297 : vector<2x8xf32> to vector<2x8x1xf32>
    %299 = vector.broadcast %298 : vector<2x8x1xf32> to vector<2x8x8xf32>
    %300 = arith.subf %296, %299 : vector<2x8x8xf32>
    %301 = math.exp %300 : vector<2x8x8xf32>
    %cst_83 = arith.constant dense<0.000000e+00> : vector<2x8xf32>
    %302 = vector.multi_reduction <add>, %301, %cst_83 [2] : vector<2x8x8xf32> to vector<2x8xf32>
    %303 = vector.shape_cast %302 : vector<2x8xf32> to vector<2x8x1xf32>
    %304 = tpu.reciprocal %303 {approx = true} : vector<2x8x1xf32> -> vector<2x8x1xf32>
    %305 = vector.broadcast %304 : vector<2x8x1xf32> to vector<2x8x8xf32>
    %306 = arith.mulf %301, %305 : vector<2x8x8xf32>
    %307 = arith.truncf %306 : vector<2x8x8xf32> to vector<2x8x8xbf16>
    "tpu.trace_start"() <{level = 10 : i32, message = "bts,bsd->btd"}> : () -> ()
    %cst_84 = arith.constant dense<0.000000e+00> : vector<2x8x8xf32>
    %308 = tpu.matmul %307, %290, %cst_84 {dimension_numbers = #tpu.dot_dimension_numbers<[2], [1], [1], [2], [0, 0, 0, 1, 1, 2], [0], [0]>} : vector<2x8x8xbf16>, vector<2x8x8xbf16>, vector<2x8x8xf32> -> vector<2x8x8xf32>
    "tpu.trace_stop"() : () -> ()
    %309 = vector.shape_cast %308 : vector<2x8x8xf32> to vector<16x8xf32>
    %310 = arith.truncf %309 : vector<16x8xf32> to vector<16x8xbf16>
    %311 = vector.extract_strided_slice %196 {offsets = [24, 0], sizes = [8, 32], strides = [1, 1]} : vector<32x32xbf16> to vector<8x32xbf16>
    %cst_85 = arith.constant dense<0.000000e+00> : vector<16x32xf32>
    %312 = tpu.matmul %310, %311, %cst_85 {dimension_numbers = #tpu.dot_dimension_numbers<[1], [0], [0], [1], [0, 0, 1, 1], [], []>} : vector<16x8xbf16>, vector<8x32xbf16>, vector<16x32xf32> -> vector<16x32xf32>
    %313 = arith.addf %284, %312 : vector<16x32xf32>
    %314 = arith.addf %162, %313 : vector<16x32xf32>
    %315 = vector.extract_strided_slice %13 {offsets = [2, 0], sizes = [1, 32], strides = [1, 1]} : vector<3x32xf32> to vector<1x32xf32>
    %cst_86 = arith.constant dense<0.000000e+00> : vector<16xf32>
    %316 = vector.multi_reduction <add>, %314, %cst_86 [1] : vector<16x32xf32> to vector<16xf32>
    %317 = vector.shape_cast %316 : vector<16xf32> to vector<16x1xf32>
    %cst_87 = arith.constant 3.200000e+01 : f32
    %318 = vector.broadcast %cst_87 : f32 to vector<16x1xf32>
    %319 = arith.divf %317, %318 : vector<16x1xf32>
    %320 = vector.broadcast %319 : vector<16x1xf32> to vector<16x32xf32>
    %321 = arith.subf %314, %320 : vector<16x32xf32>
    %322 = arith.mulf %321, %321 : vector<16x32xf32>
    %cst_88 = arith.constant dense<0.000000e+00> : vector<16xf32>
    %323 = vector.multi_reduction <add>, %322, %cst_88 [1] : vector<16x32xf32> to vector<16xf32>
    %324 = vector.shape_cast %323 : vector<16xf32> to vector<16x1xf32>
    %cst_89 = arith.constant 3.200000e+01 : f32
    %325 = vector.broadcast %cst_89 : f32 to vector<16x1xf32>
    %326 = arith.divf %324, %325 : vector<16x1xf32>
    %327 = vector.broadcast %319 : vector<16x1xf32> to vector<16x32xf32>
    %328 = arith.subf %314, %327 : vector<16x32xf32>
    %cst_90 = arith.constant 9.99999974E-6 : f32
    %329 = vector.broadcast %cst_90 : f32 to vector<16x1xf32>
    %330 = arith.addf %326, %329 : vector<16x1xf32>
    %331 = math.rsqrt %330 : vector<16x1xf32>
    %332 = vector.broadcast %331 : vector<16x1xf32> to vector<16x32xf32>
    %333 = arith.mulf %328, %332 : vector<16x32xf32>
    %334 = vector.broadcast %315 : vector<1x32xf32> to vector<16x32xf32>
    %335 = arith.mulf %333, %334 : vector<16x32xf32>
    %336 = arith.truncf %335 : vector<16x32xf32> to vector<16x32xbf16>
    %c0_91 = arith.constant 0 : index
    %c0_92 = arith.constant 0 : index
    %c0_93 = arith.constant 0 : index
    %337 = vector.load %arg8[%c0_91, %c0_92, %c0_93] : memref<1x32x128xbf16, #tpu.memory_space<vmem>>, vector<1x32x128xbf16>
    %338 = vector.shape_cast %337 : vector<1x32x128xbf16> to vector<32x128xbf16>
    %cst_94 = arith.constant dense<0.000000e+00> : vector<16x128xf32>
    %339 = tpu.matmul %336, %338, %cst_94 {dimension_numbers = #tpu.dot_dimension_numbers<[1], [0], [0], [1], [0, 0, 1, 1], [], []>} : vector<16x32xbf16>, vector<32x128xbf16>, vector<16x128xf32> -> vector<16x128xf32>
    %cst_95 = arith.constant 0.000000e+00 : f32
    %340 = vector.broadcast %cst_95 : f32 to vector<16x128xf32>
    %341 = arith.maximumf %339, %340 : vector<16x128xf32>
    %342 = arith.truncf %341 : vector<16x128xf32> to vector<16x128xbf16>
    %c0_96 = arith.constant 0 : index
    %c0_97 = arith.constant 0 : index
    %c0_98 = arith.constant 0 : index
    %343 = vector.load %arg9[%c0_96, %c0_97, %c0_98] : memref<1x128x32xbf16, #tpu.memory_space<vmem>>, vector<1x128x32xbf16>
    %344 = vector.shape_cast %343 : vector<1x128x32xbf16> to vector<128x32xbf16>
    %cst_99 = arith.constant dense<0.000000e+00> : vector<16x32xf32>
    %345 = tpu.matmul %342, %344, %cst_99 {dimension_numbers = #tpu.dot_dimension_numbers<[1], [0], [0], [1], [0, 0, 1, 1], [], []>} : vector<16x128xbf16>, vector<128x32xbf16>, vector<16x32xf32> -> vector<16x32xf32>
    %346 = arith.addf %314, %345 : vector<16x32xf32>
    %c0_100 = arith.constant 0 : index
    %c0_101 = arith.constant 0 : index
    %347 = vector.load %arg15[%c0_100, %c0_101] : memref<16x32xf32, #tpu.memory_space<vmem>>, vector<16x32xf32>
    tpu.vector_store %arg15[%c0_100, %c0_101], %346 {strides = array<i32>} : memref<16x32xf32, #tpu.memory_space<vmem>>, vector<16x32xf32>,
    %c1_i32 = arith.constant 1 : i32
    %348 = arith.cmpi eq, %arg0, %c1_i32 : i32
    %349 = arith.extui %348 : i1 to i32
    %c0_i32_102 = arith.constant 0 : i32
    %350 = arith.cmpi ne, %349, %c0_i32_102 : i32
    scf.if %350 {
      %351 = arith.truncf %346 : vector<16x32xf32> to vector<16x32xbf16>
      %c0_103 = arith.constant 0 : index
      %c0_104 = arith.constant 0 : index
      %352 = vector.load %arg10[%c0_103, %c0_104] : memref<32x16xbf16, #tpu.memory_space<vmem>>, vector<32x16xbf16>
      %cst_105 = arith.constant dense<0.000000e+00> : vector<16x16xf32>
      %353 = tpu.matmul %351, %352, %cst_105 {dimension_numbers = #tpu.dot_dimension_numbers<[1], [0], [0], [1], [0, 0, 1, 1], [], []>} : vector<16x32xbf16>, vector<32x16xbf16>, vector<16x16xf32> -> vector<16x16xf32>
      %c0_106 = arith.constant 0 : index
      %c0_107 = arith.constant 0 : index
      %354 = vector.load %arg11[%c0_106, %c0_107] : memref<1x16xf32, #tpu.memory_space<vmem>>, vector<1x16xf32>
      %355 = vector.broadcast %354 : vector<1x16xf32> to vector<16x16xf32>
      %356 = arith.addf %353, %355 : vector<16x16xf32>
      %c0_108 = arith.constant 0 : index
      %c0_109 = arith.constant 0 : index
      %357 = vector.load %arg13[%c0_108, %c0_109] : memref<16x16xf32, #tpu.memory_space<vmem>>, vector<16x16xf32>
      tpu.vector_store %arg13[%c0_108, %c0_109], %356 {strides = array<i32>} : memref<16x16xf32, #tpu.memory_space<vmem>>, vector<16x16xf32>,
      %cst_110 = arith.constant dense<0xFF800000> : vector<16xf32>
      %358 = vector.multi_reduction <maximumf>, %356, %cst_110 [1] : vector<16x16xf32> to vector<16xf32>
      %359 = vector.shape_cast %358 : vector<16xf32> to vector<16x1xf32>
      %360 = vector.broadcast %359 : vector<16x1xf32> to vector<16x16xf32>
      %361 = arith.subf %356, %360 : vector<16x16xf32>
      %362 = math.exp %361 : vector<16x16xf32>
      %cst_111 = arith.constant dense<0.000000e+00> : vector<16xf32>
      %363 = vector.multi_reduction <add>, %362, %cst_111 [1] : vector<16x16xf32> to vector<16xf32>
      %364 = vector.shape_cast %363 : vector<16xf32> to vector<16x1xf32>
      %365 = math.log %364 : vector<16x1xf32>
      %366 = arith.addf %365, %359 : vector<16x1xf32>
      %367 = tpu.iota {dimensions = array<i32: 1>} : vector<16x16xi32>
      %c0_112 = arith.constant 0 : index
      %c0_113 = arith.constant 0 : index
      %368 = vector.load %arg12[%c0_112, %c0_113] : memref<16x1xi32, #tpu.memory_space<vmem>>, vector<16x1xi32>
      %369 = vector.broadcast %368 : vector<16x1xi32> to vector<16x16xi32>
      %370 = arith.cmpi eq, %367, %369 : vector<16x16xi32>
      %371 = arith.extui %370 : vector<16x16xi1> to vector<16x16xi32>
      %372 = arith.sitofp %371 : vector<16x16xi32> to vector<16x16xf32>
      %373 = arith.mulf %356, %372 : vector<16x16xf32>
      %cst_114 = arith.constant dense<0.000000e+00> : vector<16xf32>
      %374 = vector.multi_reduction <add>, %373, %cst_114 [1] : vector<16x16xf32> to vector<16xf32>
      %375 = vector.shape_cast %374 : vector<16xf32> to vector<16x1xf32>
      %376 = arith.subf %366, %375 : vector<16x1xf32>
      %377 = vector.shape_cast %376 : vector<16x1xf32> to vector<1x16x1xf32>
      %cst_115 = arith.constant dense<0.000000e+00> : vector<1xf32>
      %378 = vector.multi_reduction <add>, %377, %cst_115 [1, 2] : vector<1x16x1xf32> to vector<1xf32>
      %379 = vector.shape_cast %378 : vector<1xf32> to vector<1x1x1xf32>
      %380 = vector.extract %379[0, 0, 0] : f32 from vector<1x1x1xf32>
      %cst_116 = arith.constant 6.250000e-02 : f32
      %381 = arith.mulf %380, %cst_116 : f32
      %382 = vector.broadcast %381 : f32 to vector<1x1xf32>
      %c0_117 = arith.constant 0 : index
      %c0_118 = arith.constant 0 : index
      %383 = vector.load %arg14[%c0_117, %c0_118] : memref<1x1xf32, #tpu.memory_space<vmem>>, vector<1x1xf32>
      tpu.vector_store %arg14[%c0_117, %c0_118], %382 {strides = array<i32>} : memref<1x1xf32, #tpu.memory_space<vmem>>, vector<1x1xf32>,
    } else {
    }
    return
  }
  func.func @transform_0(%arg0: i32) -> (i32, i32) {
    %c0_i32 = arith.constant 0 : i32
    %c0_i32_0 = arith.constant 0 : i32
    %c0_i32_1 = arith.constant 0 : i32
    return %c0_i32, %c0_i32_0 : i32, i32
  }
  func.func @transform_1(%arg0: i32) -> (i32, i32, i32) {
    %c0_i32 = arith.constant 0 : i32
    %c0_i32_0 = arith.constant 0 : i32
    %c0_i32_1 = arith.constant 0 : i32
    return %arg0, %c0_i32, %c0_i32_0 : i32, i32, i32
  }
  func.func @transform_2(%arg0: i32) -> (i32, i32, i32) {
    %c0_i32 = arith.constant 0 : i32
    %c0_i32_0 = arith.constant 0 : i32
    %c0_i32_1 = arith.constant 0 : i32
    return %arg0, %c0_i32, %c0_i32_0 : i32, i32, i32
  }
  func.func @transform_3(%arg0: i32) -> (i32, i32, i32) {
    %c0_i32 = arith.constant 0 : i32
    %c0_i32_0 = arith.constant 0 : i32
    %c0_i32_1 = arith.constant 0 : i32
    return %arg0, %c0_i32, %c0_i32_0 : i32, i32, i32
  }
  func.func @transform_4(%arg0: i32) -> (i32, i32, i32) {
    %c0_i32 = arith.constant 0 : i32
    %c0_i32_0 = arith.constant 0 : i32
    %c0_i32_1 = arith.constant 0 : i32
    return %arg0, %c0_i32, %c0_i32_0 : i32, i32, i32
  }
  func.func @transform_5(%arg0: i32) -> (i32, i32, i32) {
    %c0_i32 = arith.constant 0 : i32
    %c0_i32_0 = arith.constant 0 : i32
    %c0_i32_1 = arith.constant 0 : i32
    return %arg0, %c0_i32, %c0_i32_0 : i32, i32, i32
  }
  func.func @transform_6(%arg0: i32) -> (i32, i32, i32) {
    %c0_i32 = arith.constant 0 : i32
    %c0_i32_0 = arith.constant 0 : i32
    %c0_i32_1 = arith.constant 0 : i32
    return %arg0, %c0_i32, %c0_i32_0 : i32, i32, i32
  }
  func.func @transform_7(%arg0: i32) -> (i32, i32, i32) {
    %c0_i32 = arith.constant 0 : i32
    %c0_i32_0 = arith.constant 0 : i32
    %c0_i32_1 = arith.constant 0 : i32
    return %arg0, %c0_i32, %c0_i32_0 : i32, i32, i32
  }
  func.func @transform_8(%arg0: i32) -> (i32, i32, i32) {
    %c0_i32 = arith.constant 0 : i32
    %c0_i32_0 = arith.constant 0 : i32
    %c0_i32_1 = arith.constant 0 : i32
    return %arg0, %c0_i32, %c0_i32_0 : i32, i32, i32
  }
  func.func @transform_9(%arg0: i32) -> (i32, i32) {
    %c0_i32 = arith.constant 0 : i32
    %c0_i32_0 = arith.constant 0 : i32
    %c0_i32_1 = arith.constant 0 : i32
    return %c0_i32, %c0_i32_0 : i32, i32
  }
  func.func @transform_10(%arg0: i32) -> (i32, i32) {
    %c0_i32 = arith.constant 0 : i32
    %c0_i32_0 = arith.constant 0 : i32
    %c0_i32_1 = arith.constant 0 : i32
    return %c0_i32, %c0_i32_0 : i32, i32
  }
  func.func @transform_11(%arg0: i32) -> (i32, i32) {
    %c0_i32 = arith.constant 0 : i32
    %c0_i32_0 = arith.constant 0 : i32
    %c0_i32_1 = arith.constant 0 : i32
    return %c0_i32, %c0_i32_0 : i32, i32
  }
  func.func @transform_12(%arg0: i32) -> (i32, i32) {
    %c0_i32 = arith.constant 0 : i32
    %c0_i32_0 = arith.constant 0 : i32
    %c0_i32_1 = arith.constant 0 : i32
    return %c0_i32, %c0_i32_0 : i32, i32
  }
  func.func @transform_13(%arg0: i32) -> (i32, i32) {
    %c0_i32 = arith.constant 0 : i32
    %c0_i32_0 = arith.constant 0 : i32
    %c0_i32_1 = arith.constant 0 : i32
    return %c0_i32, %c0_i32_0 : i32, i32
  }
}

</mosaic_0001>

<bundles_post_ra>
// kernel: model_forward.1
= control target key start
LH: loop header
LB: loop body
LE: loop exit
PB: predicated region body
PF: predicated region fallthrough
CT: control target
= control target key end

     0   :  { %s4988_s0 = inlined_call_operand.vmem [shape: f32[16,32], index: 0, kind: input, shape index: {}]   ;;  %s4989_s1 = inlined_call_operand.vmem [shape: f32[2,3,32], index: 1, kind: input, shape index: {}]   ;;  %s4990_s2 = inlined_call_operand.vmem [shape: bf16[2,32,96], index: 2, kind: input, shape index: {}]   ;;  %s4991_s3 = inlined_call_operand.vmem [shape: bf16[2,32,32], index: 3, kind: input, shape index: {}]   ;;  %s4992_s4 = inlined_call_operand.vmem [shape: bf16[2,32,32], index: 4, kind: input, shape index: {}]   ;;  %s4993_s5 = inlined_call_operand.vmem [shape: bf16[2,32,64], index: 5, kind: input, shape index: {}]   ;;  %s4994_s6 = inlined_call_operand.vmem [shape: bf16[2,32,32], index: 6, kind: input, shape index: {}]   ;;  %s4995_s7 = inlined_call_operand.vmem [shape: bf16[2,32,128], index: 7, kind: input, shape index: {}]   ;;  %s4996_s8 = inlined_call_operand.vmem [shape: bf16[2,128,32], index: 8, kind: input, shape index: {}]   ;;  %s4997_s9 = inlined_call_operand.vmem [shape: bf16[32,16], index: 9, kind: input, shape index: {}]   ;;  %s4998_s10 = inlined_call_operand.vmem [shape: f32[1,16], index: 10, kind: input, shape index: {}]   ;;  %s4999_s11 = inlined_call_operand.vmem [shape: s32[16,1], index: 11, kind: input, shape index: {}]   ;;  %s5000_s12 = inlined_call_operand.hbm [shape: f32[16,16], index: 12, kind: output, shape index: {0}]   ;;  %s5001_s13 = inlined_call_operand.hbm [shape: f32[1,1], index: 13, kind: output, shape index: {1}]  }
   0x1   :  { %5004 = sst [smem:[#allocation10_spill]] %s4989_s1 }
   0x2   :  { %5005 = sst [smem:[#allocation11_spill]] %s4990_s2 }
   0x3   :  { %5006 = sst [smem:[#allocation12_spill]] %s5001_s13 }
   0x4   :  { %19 = vsyncpa [#allocation4], 0 }
   0x5   :  { %20 = vsyncpa [#allocation6], 0  ;;  %s4359_s25 = smov 0  }
   0x6 LB: > { %5007 = sst [smem:[#allocation9_spill]] %s4266_s25  ;;  %s4365_s26 = sadd.s32 4294967295, %s4266_s25   ;;  %s4266_s25 = sphi %s4359_s25, %s26_s25  }
   0x7   : > { %p3539_p0 = scmp.ge.s32.totalorder %s4266_s25, 1  ;;  %p451_p1 = scmp.lt.s32.totalorder %s4266_s25, 3 }
   0x9   : > { %p452_p2 = pnand %p3539_p0, %p451_p1 }
   0xa   : > { %p524_p3 = scmp.lt.s32.totalorder (!%p452_p2), %s4365_s26, 1  ;;  %s5008_s1 = sld [smem:[#allocation10_spill]] (!%p452_p2) }
   0xb   : > { %455 = sbr.rel (%p452_p2) target bundleno = 8798 (0x225e), region = 68  ;;  %s5009_s2 = sld [smem:[#allocation11_spill]] (!%p452_p2) }
   0xc   : > { %p3555_p4 = scmp.ne.s32.totalorder (!%p452_p2), %s4365_s26, 0 }
  0x12   : > { %s525_s27 = scalar_select %p524_p3, %s4365_s26, 1 }
  0x13   : > { %567 = sbr.rel (%p3555_p4) target bundleno = 26 (0x1a), region = 72  ;;  %v568_v0 = vld [vmem:[%s4988_s0] sm:$0xff] (!%p3555_p4)  ;;  %vm570_vm0 = vcmask (!%p3555_p4), 261120   ;;  %v569_v1 = vld [vmem:[%s4988_s0 + $0x8] sm:$0xff] (!%p3555_p4) }
  0x14   : > { %s3540_s28 = sshll.u32 %s525_s27, 2  ;;  %s3635_s29 = sshll.u32 %s525_s27, 4  ;;  %571 = vst.msk [vmem:[#allocation2] sm:$0xff] (!%p3555_p4), %vm570_vm0, %v568_v0  ;;  %572 = vst.msk [vmem:[#allocation2 + $0x8] sm:$0xff] (!%p3555_p4), %vm570_vm0, %v569_v1 }
  0x15   : > { %s4374_s15 = scalar_lea.vmem %s5008_s1, %s3540_s28  ;;  %s4379_s18 = scalar_lea.vmem %s5009_s2, %s3635_s29 }
  0x16   : > { %s4384_s21 = scalar_lea.vmem %s4991_s3, %s3635_s29  ;;  %s4389_s24 = scalar_lea.vmem %s4992_s4, %s3635_s29 }
  0x17   : > { %s4394_s28 = scalar_lea.vmem %s4993_s5, %s3635_s29  ;;  %s4399_s16 = scalar_lea.vmem %s4994_s6, %s3635_s29 }
  0x18   : > { %s4404_s19 = scalar_lea.vmem %s4995_s7, %s3635_s29  ;;  %s3641_s20 = sshll.u32 %s525_s27, 6 }
  0x19   : > { %s4409_s23 = scalar_lea.vmem %s4996_s8, %s3641_s20 }
  0x1a PF: > { %vm585_vm1 = vcmask 261120   ;;  %v4095_v16 = vld [vmem:[%s4379_s18] sm:$0xff]   ;;  %v4268_v17 = vmov 0.0   ;;  %vm4269_vm2 = vmmov 0   ;;  %v4096_v18 = vld [vmem:[%s4379_s18 + $0x8] sm:$0xff]   ;;  %v573_v24 = vlaneseq  ;;  %s4270_s1 = smov 96  }
  0x1b   : > { %v4418_v2 = vld [vmem:[#allocation2] sm:$0xff]  ;;  %v4420_v3 = vld [vmem:[#allocation2 + $0x8] sm:$0xff]  ;;  %3752 = vmatprep.subr.bf16.mxu1 %v4268_v17  ;;  %3756 = vmatprep.mubr.msk.bf16.mxu1 %vm4269_vm2, %v4268_v17  ;;  %vm692_vm3 = vcmask 64512   ;;  %v4271_v48 = vmov -1e+30   ;;  %s4272_s2 = smov 64  }
  0x1c   : > { %v586_v4 = vsel %vm585_vm1, %v4418_v2, 0.0  ;;  %v589_v5 = vsel %vm585_vm1, %v4420_v3, 0.0  ;;  %3753 = vmatpush3.bf16.msra.mxu1 %v4095_v16  ;;  %3778 = vmatprep.subr.bf16.mxu0 %v4268_v17  ;;  %v4440_v26 = vshrl.u32 %v573_v24, 7  ;;  %v4444_v29 = vld [vmem:[%s4374_s15] sm:$0x7]  ;;  %v4470_v47 = vand.u32 127, %v573_v24 }
  0x1d   : > { %587 = vadd.xlane.f32.xlu0 %v586_v4  ;;  %3754 = vmatprep.subr.bf16.mxu1 %v4268_v17  ;;  %s4273_s27 = smov 88   ;;  %vm820_vm5 = vcmask 1043456   ;;  %s4274_s29 = smov 120  }
  0x1e   : > { %3780 = vmatprep.mubr.msk.bf16.mxu0 %vm4269_vm2, %v4268_v17  ;;  %v615_v27 = vsub.s32 0, %v4440_v26  ;;  %vm577_vm4 = vcmp.ge.s32.totalorder %v4440_v26, %v4470_v47  ;;  %s4275_s18 = smov 56   ;;  %s4276_s17 = smov 80  }
  0x1f   : > { %v4474_v49 = vsel %vm577_vm4, 0.0, %v4271_v48  ;;  %s4277_s20 = smov 112   ;;  %s4278_s22 = smov 48  }
  0x20   : > { %3755 = vmatpush3.bf16.msra.mxu1 %v4096_v18  ;;  %v616_v31 = vrot.slane %v4444_v29, %v615_v27  ;;  %s4279_s13 = smov 72   ;;  %s4280_s25 = smov 104  }
  0x21   : > { %590 = vadd.xlane.f32.xlu0 %v589_v5  ;;  %3760 = vmatprep.subr.bf16.mxu1 %v4268_v17  ;;  %s4281_s30 = smov 40   ;;  %p3622_p5 = scmp.ne.s32.totalorder %s4365_s26, 1 }
  0x22   : > { %vm4283_vm6 = vmmov (!%p3622_p5), 0   ;;  %vm3314_vm7 = vcmask (!%p3622_p5), 130048   ;;  %vm3365_vm10 = vcmask (!%p3622_p5), 7168   ;;  %vm3380_vm11 = vcmask (!%p3622_p5), 0  }
  0xaa   : > { %v588_v6 = vpop.xlane.xlu0 %587 }
  0xab   : > { %v593_v7 = vmul.f32 0.03125, %v588_v6 }
  0xad   : > { %v595_v8 = vsub.f32 %v4418_v2, %v593_v7 }
  0xae   : > { %v591_v9 = vpop.xlane.xlu0 %590 }
  0xaf   : > { %v594_v10 = vmul.f32 0.03125, %v591_v9  ;;  %v597_v11 = vmul.f32 %v595_v8, %v595_v8 }
  0xb1   : > { %v596_v12 = vsub.f32 %v4420_v3, %v594_v10  ;;  %v599_v13 = vsel %vm585_vm1, %v597_v11, 0.0 }
  0xb2   : > { %600 = vadd.xlane.f32.xlu1 %v599_v13 }
  0xb3   : > { %v598_v14 = vmul.f32 %v596_v12, %v596_v12 }
  0xb5   : > { %v602_v15 = vsel %vm585_vm1, %v598_v14, 0.0 }
  0xb6   : > { %603 = vadd.xlane.f32.xlu1 %v602_v15 }
 0x13f   : > { %v601_v19 = vpop.xlane.xlu1 %600 }
 0x140   : > { %v605_v20 = vmul.f32 0.03125, %v601_v19 }
 0x142   : > { %v607_v21 = vadd.f32 1e-05, %v605_v20 }
 0x143   : > { %v604_v22 = vpop.xlane.xlu1 %603 }
 0x144   : > { %4111 = vrsqrt.f32 %v607_v21  ;;  %v606_v23 = vmul.f32 0.03125, %v604_v22 }
 0x146   : > { %v608_v25 = vadd.f32 1e-05, %v606_v23 }
 0x148   : > { %4113 = vrsqrt.f32 %v608_v25 }
 0x14e   : > { %v4112_v28 = vpop.eup %4111 }
 0x14f   : > { %v611_v30 = vmul.f32 %v4112_v28, %v595_v8 }
 0x151   : > { %v617_v34 = vmul.f32 %v616_v31, %v611_v30 }
 0x152   : > { %v4114_v32 = vpop.eup %4113 }
 0x153   : > { %v612_v33 = vmul.f32 %v4114_v32, %v596_v12 }
 0x155   : > { %v618_v35 = vmul.f32 %v616_v31, %v612_v33 }
 0x157   : > { %v619_v36 = vpack.c.bf16 %v618_v35, %v617_v34 }
 0x159   : > { %3757 = vmatmul.mubr.msk.bf16.vlgmr.msra.gmra.mrb[0].mxu1 %vm585_vm1, %v619_v36 }
 0x15a   : > { %3762 = vmatprep.mubr.msk.bf16.mxu1 %vm4269_vm2, %v4268_v17 }
 0x22c   : > { %v673_v37 = vpop.f32.mrb[0].mxu1 }
 0x22d   : > { %v4450_v38 = vpack.c.bf16 %v673_v37, %v673_v37  ;;  %v3758_v39 = vpop.f32.mrb[1].mxu1 }
 0x22e   : > { %v676_v40 = vpop.f32.mrb[2].mxu1 }
 0x22f   : > { %v4452_v41 = vpack.c.bf16 %v676_v40, %v676_v40  ;;  %690 = vrot.lane.b32.xlu0 %v4450_v38, %s4270_s1  ;;  %v3759_v42 = vpop.f32.mrb[3].mxu1 }
 0x231   : > { %739 = vrot.lane.b32.xlu1 %v4452_v41, %s4270_s1 }
 0x2a1   : > { %v691_v43 = vpop.permute.xlu0 %690 }
 0x2a2   : > { %v697_v44 = vsel %vm692_vm3, %v691_v43, 0 }
 0x2a3   : > { %3761 = vmatpush3.bf16.xpose.msra.mxu1 %v697_v44  ;;  %v740_v45 = vpop.permute.xlu1 %739 }
 0x2a4   : > { %3766 = vmatprep.subr.bf16.mxu1 %v4268_v17  ;;  %v745_v46 = vsel %vm692_vm3, %v740_v45, 0 }
 0x2aa   : > { %3763 = vmatmul.mubr.msk.bf16.vlgmr.msra.gmra.mrb[4].mxu1 %vm692_vm3, %v4450_v38 }
 0x2ab   : > { %3767 = vmatpush3.bf16.xpose.msra.mxu1 %v745_v46  ;;  %3768 = vmatprep.mubr.msk.bf16.mxu1 %vm4269_vm2, %v4268_v17 }
 0x2ac   : > { %3772 = vmatprep.subr.bf16.mxu1 %v4268_v17 }
 0x2b2   : > { %3769 = vmatmul.mubr.msk.bf16.vlgmr.msra.gmra.mrb[8].mxu1 %vm692_vm3, %v4452_v41 }
 0x2b3   : > { %3774 = vmatprep.mubr.msk.bf16.mxu1 %vm4269_vm2, %v4268_v17 }
 0x37d   : > { %v733_v50 = vpop.f32.mrb[4].mxu1 }
 0x37e   : > { %v787_v51 = vmul.f32 0.35355338, %v733_v50  ;;  %v3764_v52 = vpop.f32.mrb[5].mxu1 }
 0x37f   : > { %v736_v53 = vpop.f32.mrb[6].mxu1 }
 0x380   : > { %v3765_v54 = vpop.f32.mrb[7].mxu1  ;;  %v789_v55 = vadd.f32 %v787_v51, %v4474_v49 }
 0x382   : > { %v791_v56 = vsel %vm692_vm3, %v789_v55, -inf }
 0x383   : > { %792 = vmax.xlane.f32.xlu1 %v791_v56 }
 0x385   : > { %v781_v57 = vpop.f32.mrb[8].mxu1 }
 0x386   : > { %v788_v58 = vmul.f32 0.35355338, %v781_v57  ;;  %v3770_v59 = vpop.f32.mrb[9].mxu1 }
 0x387   : > { %v784_v60 = vpop.f32.mrb[10].mxu1 }
 0x388   : > { %v3771_v61 = vpop.f32.mrb[11].mxu1  ;;  %v790_v62 = vadd.f32 %v788_v58, %v4474_v49 }
 0x38a   : > { %v794_v63 = vsel %vm692_vm3, %v790_v62, -inf }
 0x38b   : > { %795 = vmax.xlane.f32.xlu0 %v794_v63 }
 0x394   : > { %864 = vrot.lane.b32.xlu1 %v4452_v41, %s4272_s2 }
 0x398   : > { %915 = vrot.lane.b32.xlu1 %v4450_v38, %s4273_s27 }
 0x410   : > { %v793_v0 = vpop.xlane.xlu1 %792 }
 0x411   : > { %v797_v1 = vsub.f32 %v789_v55, %v793_v0 }
 0x413   : > { %v799_v4 = vmul.f32 1.442695, %v797_v1 }
 0x414   : > { %v865_v5 = vpop.permute.xlu1 %864 }
 0x415   : > { %4115 = vpow2.f32 %v799_v4  ;;  %v870_v6 = vsel %vm820_vm5, %v865_v5, 0 }
 0x416   : > { %3779 = vmatpush3.bf16.msra.mxu0 %v870_v6 }
 0x417   : > { %3790 = vmatprep.subr.bf16.mxu0 %v4268_v17 }
 0x418   : > { %v796_v7 = vpop.xlane.xlu0 %795  ;;  %v916_v15 = vpop.permute.xlu1 %915 }
 0x419   : > { %v798_v8 = vsub.f32 %v790_v62, %v796_v7  ;;  %v921_v23 = vsel %vm692_vm3, %v916_v15, 0 }
 0x41b   : > { %v801_v9 = vmul.f32 1.442695, %v798_v8 }
 0x41d   : > { %4117 = vpow2.f32 %v801_v9 }
 0x41f   : > { %v4116_v10 = vpop.eup %4115 }
 0x420   : > { %v803_v11 = vsel %vm692_vm3, %v4116_v10, 0.0 }
 0x421   : > { %804 = vadd.xlane.f32.xlu0 %v803_v11 }
 0x427   : > { %v4118_v12 = vpop.eup %4117 }
 0x428   : > { %v806_v13 = vsel %vm692_vm3, %v4118_v12, 0.0 }
 0x429   : > { %807 = vadd.xlane.f32.xlu1 %v806_v13 }
 0x437   : > { %815 = vrot.lane.b32.xlu0 %v4450_v38, %s4272_s2 }
 0x43a   : > { %965 = vrot.lane.b32.xlu1 %v4452_v41, %s4273_s27 }
 0x43b   : > { %913 = vrot.lane.b32.xlu0 %v4450_v38, %s4274_s29 }
 0x43e   : > { %963 = vrot.lane.b32.xlu1 %v4452_v41, %s4274_s29 }
 0x4ae   : > { %v805_v14 = vpop.xlane.xlu0 %804 }
 0x4af   : > { %4119 = vrcp.f32 %v805_v14 }
 0x4b2   : > { %v816_v16 = vpop.permute.xlu0 %815 }
 0x4b3   : > { %v822_v18 = vsel %vm820_vm5, %v816_v16, 0 }
 0x4b4   : > { %3773 = vmatpush3.bf16.msra.mxu1 %v822_v18 }
 0x4b5   : > { %3784 = vmatprep.subr.bf16.mxu1 %v4268_v17 }
 0x4b6   : > { %v808_v19 = vpop.xlane.xlu1 %807  ;;  %v914_v30 = vpop.permute.xlu0 %913 }
 0x4b7   : > { %4121 = vrcp.f32 %v808_v19  ;;  %v681_v19 = vld [vmem:[%s4384_s21] sm:$0xf] }
 0x4b9   : > { %v4120_v20 = vpop.eup %4119 }
 0x4ba   : > { %v811_v21 = vmul.f32 %v4120_v20, %v4116_v10  ;;  %v966_v27 = vpop.permute.xlu1 %965 }
 0x4bb   : > { %v971_v31 = vsel %vm692_vm3, %v966_v27, 0 }
 0x4bc   : > { %v813_v22 = vpack.c.bf16 %v811_v21, %v811_v21 }
 0x4be   : > { %3775 = vmatmul.mubr.msk.bf16.vlgmr.msra.gmra.mrb[12].mxu1 %vm692_vm3, %v813_v22  ;;  %v964_v32 = vpop.permute.xlu1 %963  ;;  %v1189_v22 = vsel %vm820_vm5, %v681_v19, 0 }
 0x4bf   : > { %3785 = vmatpush3.bf16.xpose.msra.mxu1 %v921_v23  ;;  %3786 = vmatprep.mubr.msk.bf16.mxu1 %vm4269_vm2, %v4268_v17 }
 0x4c0   : > { %3796 = vmatprep.subr.bf16.mxu1 %v4268_v17 }
 0x4c1   : > { %v4122_v24 = vpop.eup %4121 }
 0x4c2   : > { %v812_v25 = vmul.f32 %v4122_v24, %v4118_v12 }
 0x4c4   : > { %v814_v28 = vpack.c.bf16 %v812_v25, %v812_v25 }
 0x4c6   : > { %3781 = vmatmul.mubr.msk.bf16.vlgmr.msra.gmra.mrb[0].mxu0 %vm692_vm3, %v814_v28  ;;  %3787 = vmatmul.mubr.msk.bf16.vlgmr.msra.gmra.mrb[16].mxu1 %vm692_vm3, %v914_v30  ;;  %v682_v28 = vld [vmem:[%s4384_s21 + $0x4] sm:$0xf] }
 0x4c7   : > { %3791 = vmatpush3.bf16.xpose.msra.mxu0 %v971_v31  ;;  %3792 = vmatprep.mubr.msk.bf16.mxu0 %vm4269_vm2, %v4268_v17  ;;  %v1142_v30 = vsel %vm820_vm5, %v682_v28, 0 }
 0x4c8   : > { %3802 = vmatprep.subr.bf16.mxu0 %v4268_v17  ;;  %3798 = vmatprep.mubr.msk.bf16.mxu1 %vm4269_vm2, %v4268_v17 }
 0x4ce   : > { %3793 = vmatmul.mubr.msk.bf16.vlgmr.msra.gmra.mrb[4].mxu0 %vm692_vm3, %v964_v32 }
 0x4cf   : > { %3804 = vmatprep.mubr.msk.bf16.mxu0 %vm4269_vm2, %v4268_v17 }
 0x591   : > { %v4512_v33 = vpop.f32.mrb[12].mxu1 }
 0x592   : > { %v3776_v34 = vpop.f32.mrb[13].mxu1 }
 0x593   : > { %v861_v35 = vpop.f32.mrb[14].mxu1 }
 0x594   : > { %v3777_v36 = vpop.f32.mrb[15].mxu1 }
 0x599   : > { %v4514_v37 = vpop.f32.mrb[0].mxu0  ;;  %v957_v39 = vpop.f32.mrb[16].mxu1 }
 0x59a   : > { %v912_v40 = vpack.c.bf16 %v4514_v37, %v4512_v33  ;;  %v1013_v42 = vmul.f32 0.35355338, %v957_v39  ;;  %v3782_v43 = vpop.f32.mrb[1].mxu0  ;;  %v3788_v44 = vpop.f32.mrb[17].mxu1 }
 0x59b   : > { %v909_v45 = vpop.f32.mrb[2].mxu0  ;;  %v960_v46 = vpop.f32.mrb[18].mxu1 }
 0x59c   : > { %v3783_v48 = vpop.f32.mrb[3].mxu0  ;;  %v3789_v50 = vpop.f32.mrb[19].mxu1  ;;  %v1015_v51 = vadd.f32 %v1013_v42, %v4474_v49 }
 0x59e   : > { %v1017_v52 = vsel %vm692_vm3, %v1015_v51, -inf }
 0x59f   : > { %1018 = vmax.xlane.f32.xlu0 %v1017_v52 }
 0x5a1   : > { %v1007_v53 = vpop.f32.mrb[4].mxu0 }
 0x5a2   : > { %v1014_v54 = vmul.f32 0.35355338, %v1007_v53  ;;  %v3794_v55 = vpop.f32.mrb[5].mxu0 }
 0x5a3   : > { %v1010_v56 = vpop.f32.mrb[6].mxu0 }
 0x5a4   : > { %v3795_v57 = vpop.f32.mrb[7].mxu0  ;;  %v1016_v58 = vadd.f32 %v1014_v54, %v4474_v49 }
 0x5a6   : > { %v1020_v59 = vsel %vm692_vm3, %v1016_v58, -inf }
 0x5a7   : > { %1021 = vmax.xlane.f32.xlu1 %v1020_v59 }
 0x5b8   : > { %1089 = vrot.lane.b32.xlu1 %v4452_v41, %s4275_s18 }
 0x5bc   : > { %1234 = vrot.lane.b32.xlu1 %v4450_v38, %s4276_s17 }
 0x5c0   : > { %1284 = vrot.lane.b32.xlu1 %v4452_v41, %s4276_s17 }
 0x5c4   : > { %1282 = vrot.lane.b32.xlu1 %v4452_v41, %s4277_s20 }
 0x62c   : > { %v1019_v60 = vpop.xlane.xlu0 %1018 }
 0x62d   : > { %v1023_v61 = vsub.f32 %v1015_v51, %v1019_v60 }
 0x62f   : > { %v1025_v62 = vmul.f32 1.442695, %v1023_v61 }
 0x631   : > { %4123 = vpow2.f32 %v1025_v62 }
 0x634   : > { %v1022_v63 = vpop.xlane.xlu1 %1021 }
 0x635   : > { %v1024_v0 = vsub.f32 %v1016_v58, %v1022_v63 }
 0x637   : > { %v1027_v1 = vmul.f32 1.442695, %v1024_v0 }
 0x638   : > { %v1090_v4 = vpop.permute.xlu1 %1089 }
 0x639   : > { %4125 = vpow2.f32 %v1027_v1  ;;  %v1095_v5 = vsel %vm820_vm5, %v1090_v4, 0 }
 0x63a   : > { %3803 = vmatpush3.bf16.msra.mxu0 %v1095_v5 }
 0x63b   : > { %v4124_v6 = vpop.eup %4123  ;;  %3814 = vmatprep.subr.bf16.mxu0 %v4268_v17 }
 0x63c   : > { %v1029_v7 = vsel %vm692_vm3, %v4124_v6, 0.0  ;;  %v1235_v23 = vpop.permute.xlu1 %1234 }
 0x63d   : > { %1030 = vadd.xlane.f32.xlu0 %v1029_v7 }
 0x640   : > { %v1285_v24 = vpop.permute.xlu1 %1284 }
 0x641   : > { %v1290_v25 = vsel %vm692_vm3, %v1285_v24, 0 }
 0x643   : > { %v4126_v8 = vpop.eup %4125 }
 0x644   : > { %v1032_v9 = vsel %vm692_vm3, %v4126_v8, 0.0  ;;  %v1283_v27 = vpop.permute.xlu1 %1282 }
 0x645   : > { %1033 = vadd.xlane.f32.xlu0 %v1032_v9 }
 0x65b   : > { %1041 = vrot.lane.b32.xlu0 %v4450_v38, %s4275_s18 }
 0x65f   : > { %1232 = vrot.lane.b32.xlu0 %v4450_v38, %s4277_s20 }
 0x6ca   : > { %v1031_v10 = vpop.xlane.xlu0 %1030 }
 0x6cb   : > { %4127 = vrcp.f32 %v1031_v10 }
 0x6d2   : > { %v1034_v11 = vpop.xlane.xlu0 %1033 }
 0x6d3   : > { %4129 = vrcp.f32 %v1034_v11 }
 0x6d5   : > { %v4128_v12 = vpop.eup %4127 }
 0x6d6   : > { %v1037_v13 = vmul.f32 %v4128_v12, %v4124_v6  ;;  %v1042_v14 = vpop.permute.xlu0 %1041 }
 0x6d7   : > { %v1047_v15 = vsel %vm820_vm5, %v1042_v14, 0 }
 0x6d8   : > { %3797 = vmatpush3.bf16.msra.mxu1 %v1047_v15  ;;  %v1039_v16 = vpack.c.bf16 %v1037_v13, %v1037_v13 }
 0x6d9   : > { %3808 = vmatprep.subr.bf16.mxu1 %v4268_v17 }
 0x6da   : > { %v1233_v45 = vpop.permute.xlu0 %1232 }
 0x6db   : > { %3799 = vmatmul.mubr.msk.bf16.vlgmr.msra.gmra.mrb[20].mxu1 %vm692_vm3, %v1039_v16 }
 0x6dc   : > { %3810 = vmatprep.mubr.msk.bf16.mxu1 %vm4269_vm2, %v4268_v17  ;;  %3809 = vmatpush3.bf16.msra.mxu1 %v1142_v30 }
 0x6dd   : > { %v4130_v18 = vpop.eup %4129  ;;  %3820 = vmatprep.subr.bf16.mxu1 %v4268_v17 }
 0x6de   : > { %v1038_v20 = vmul.f32 %v4130_v18, %v4126_v8 }
 0x6e0   : > { %v1040_v21 = vpack.c.bf16 %v1038_v20, %v1038_v20 }
 0x6e2   : > { %3805 = vmatmul.mubr.msk.bf16.vlgmr.msra.gmra.mrb[8].mxu0 %vm692_vm3, %v1040_v21 }
 0x6e3   : > { %3815 = vmatpush3.bf16.msra.mxu0 %v1189_v22  ;;  %3816 = vmatprep.mubr.msk.bf16.mxu0 %vm4269_vm2, %v4268_v17 }
 0x6e4   : > { %3826 = vmatprep.subr.bf16.mxu0 %v4268_v17 }
 0x6ea   : > { %3817 = vmatmul.mubr.msk.bf16.vlgmr.msra.gmra.mrb[12].mxu0 %vm692_vm3, %v912_v40  ;;  %v1240_v40 = vsel %vm692_vm3, %v1235_v23, 0 }
 0x6eb   : > { %3828 = vmatprep.mubr.msk.bf16.mxu0 %vm4269_vm2, %v4268_v17 }
 0x6ec   : > { %3827 = vmatpush3.bf16.xpose.msra.mxu0 %v1290_v25 }
 0x6ed   : > { %3838 = vmatprep.subr.bf16.mxu0 %v4268_v17 }
 0x6f3   : > { %3829 = vmatmul.mubr.msk.bf16.vlgmr.msra.gmra.mrb[16].mxu0 %vm692_vm3, %v1283_v27 }
 0x6f4   : > { %3840 = vmatprep.mubr.msk.bf16.mxu0 %vm4269_vm2, %v4268_v17 }
 0x7ae   : > { %v1083_v31 = vpop.f32.mrb[20].mxu1 }
 0x7af   : > { %v3800_v32 = vpop.f32.mrb[21].mxu1 }
 0x7b0   : > { %v1086_v33 = vpop.f32.mrb[22].mxu1 }
 0x7b1   : > { %v3801_v34 = vpop.f32.mrb[23].mxu1 }
 0x7b5   : > { %v1131_v35 = vpop.f32.mrb[8].mxu0 }
 0x7b6   : > { %v1137_v36 = vpack.c.bf16 %v1131_v35, %v1083_v31  ;;  %v3806_v37 = vpop.f32.mrb[9].mxu0 }
 0x7b7   : > { %v1134_v39 = vpop.f32.mrb[10].mxu0 }
 0x7b8   : > { %v3807_v42 = vpop.f32.mrb[11].mxu0  ;;  %3811 = vmatmul.mubr.msk.bf16.vlgmr.msra.gmra.mrb[24].mxu1 %vm692_vm3, %v1137_v36 }
 0x7b9   : > { %3821 = vmatpush3.bf16.xpose.msra.mxu1 %v1240_v40  ;;  %3822 = vmatprep.mubr.msk.bf16.mxu1 %vm4269_vm2, %v4268_v17  ;;  %v683_v42 = vld [vmem:[%s4384_s21 + $0x8] sm:$0xf] }
 0x7ba   : > { %3832 = vmatprep.subr.bf16.mxu1 %v4268_v17 }
 0x7bd   : > { %v1225_v43 = vpop.f32.mrb[12].mxu0 }
 0x7be   : > { %v3818_v44 = vpop.f32.mrb[13].mxu0 }
 0x7bf   : > { %v1228_v46 = vpop.f32.mrb[14].mxu0 }
 0x7c0   : > { %v3819_v48 = vpop.f32.mrb[15].mxu0  ;;  %3823 = vmatmul.mubr.msk.bf16.vlgmr.msra.gmra.mrb[28].mxu1 %vm692_vm3, %v1233_v45 }
 0x7c1   : > { %3834 = vmatprep.mubr.msk.bf16.mxu1 %vm4269_vm2, %v4268_v17 }
 0x7c6   : > { %v1326_v50 = vpop.f32.mrb[16].mxu0 }
 0x7c7   : > { %v1333_v51 = vmul.f32 0.35355338, %v1326_v50  ;;  %v3830_v52 = vpop.f32.mrb[17].mxu0 }
 0x7c8   : > { %v1329_v53 = vpop.f32.mrb[18].mxu0 }
 0x7c9   : > { %v3831_v54 = vpop.f32.mrb[19].mxu0  ;;  %v1335_v55 = vadd.f32 %v1333_v51, %v4474_v49 }
 0x7cb   : > { %v1339_v56 = vsel %vm692_vm3, %v1335_v55, -inf }
 0x7cc   : > { %1340 = vmax.xlane.f32.xlu1 %v1339_v56 }
 0x7dd   : > { %1408 = vrot.lane.b32.xlu1 %v4452_v41, %s4278_s22 }
 0x7e1   : > { %1508 = vrot.lane.b32.xlu1 %v4450_v38, %s4279_s13 }
 0x7e5   : > { %1558 = vrot.lane.b32.xlu1 %v4452_v41, %s4279_s13 }
 0x7e9   : > { %1556 = vrot.lane.b32.xlu1 %v4452_v41, %s4280_s25 }
 0x859   : > { %v1341_v57 = vpop.xlane.xlu1 %1340 }
 0x85a   : > { %v1343_v60 = vsub.f32 %v1335_v55, %v1341_v57 }
 0x85c   : > { %v1346_v61 = vmul.f32 1.442695, %v1343_v60 }
 0x85d   : > { %v1409_v58 = vpop.permute.xlu1 %1408 }
 0x85e   : > { %v1414_v59 = vsel %vm820_vm5, %v1409_v58, 0  ;;  %4131 = vpow2.f32 %v1346_v61 }
 0x85f   : > { %3839 = vmatpush3.bf16.msra.mxu0 %v1414_v59 }
 0x860   : > { %3850 = vmatprep.subr.bf16.mxu0 %v4268_v17 }
 0x861   : > { %v1509_v24 = vpop.permute.xlu1 %1508 }
 0x862   : > { %v1514_v27 = vsel %vm692_vm3, %v1509_v24, 0 }
 0x865   : > { %v1559_v53 = vpop.permute.xlu1 %1558 }
 0x866   : > { %v1564_v58 = vsel %vm692_vm3, %v1559_v53, 0 }
 0x868   : > { %v4132_v13 = vpop.eup %4131 }
 0x869   : > { %v1351_v14 = vsel %vm692_vm3, %v4132_v13, 0.0  ;;  %v1557_v60 = vpop.permute.xlu1 %1556 }
 0x88b   : > { %v1178_v62 = vpop.f32.mrb[24].mxu1 }
 0x88c   : > { %v4581_v63 = vadd.f32 %v1225_v43, %v1178_v62  ;;  %v3812_v0 = vpop.f32.mrb[25].mxu1  ;;  %v1461_v43 = vsel %vm820_vm5, %v683_v42, 0 }
 0x88d   : > { %v1181_v1 = vpop.f32.mrb[26].mxu1 }
 0x88e   : > { %v4583_v4 = vadd.f32 %v1228_v46, %v1181_v1  ;;  %v3813_v5 = vpop.f32.mrb[27].mxu1 }
 0x893   : > { %v1276_v6 = vpop.f32.mrb[28].mxu1 }
 0x894   : > { %v1332_v7 = vmul.f32 0.35355338, %v1276_v6  ;;  %v3824_v8 = vpop.f32.mrb[29].mxu1 }
 0x895   : > { %v1279_v9 = vpop.f32.mrb[30].mxu1 }
 0x896   : > { %v3825_v10 = vpop.f32.mrb[31].mxu1  ;;  %v1334_v11 = vadd.f32 %v1332_v7, %v4474_v49 }
 0x898   : > { %v1336_v12 = vsel %vm692_vm3, %v1334_v11, -inf }
 0x899   : > { %1337 = vmax.xlane.f32.xlu0 %v1336_v12 }
 0x89d   : > { %1352 = vadd.xlane.f32.xlu0 %v1351_v14 }
 0x926   : > { %v1338_v15 = vpop.xlane.xlu0 %1337 }
 0x927   : > { %v1342_v16 = vsub.f32 %v1334_v11, %v1338_v15 }
 0x929   : > { %v1344_v18 = vmul.f32 1.442695, %v1342_v16 }
 0x92a   : > { %v1353_v19 = vpop.xlane.xlu0 %1352 }
 0x92b   : > { %4133 = vpow2.f32 %v1344_v18 }
 0x92c   : > { %4135 = vrcp.f32 %v1353_v19 }
 0x935   : > { %v4134_v20 = vpop.eup %4133 }
 0x936   : > { %v4136_v21 = vpop.eup %4135  ;;  %v1348_v22 = vsel %vm692_vm3, %v4134_v20, 0.0 }
 0x937   : > { %v1357_v23 = vmul.f32 %v4136_v21, %v4132_v13  ;;  %1349 = vadd.xlane.f32.xlu0 %v1348_v22 }
 0x939   : > { %v1359_v25 = vpack.c.bf16 %v1357_v23, %v1357_v23 }
 0x93b   : > { %3841 = vmatmul.mubr.msk.bf16.vlgmr.msra.gmra.mrb[20].mxu0 %vm692_vm3, %v1359_v25 }
 0x93c   : > { %3851 = vmatpush3.bf16.xpose.msra.mxu0 %v1514_v27  ;;  %3852 = vmatprep.mubr.msk.bf16.mxu0 %vm4269_vm2, %v4268_v17 }
 0x93d   : > { %3862 = vmatprep.subr.bf16.mxu0 %v4268_v17 }
 0x94d   : > { %1360 = vrot.lane.b32.xlu0 %v4450_v38, %s4278_s22 }
 0x951   : > { %1506 = vrot.lane.b32.xlu0 %v4450_v38, %s4280_s25 }
 0x9c4   : > { %v1350_v28 = vpop.xlane.xlu0 %1349 }
 0x9c5   : > { %4137 = vrcp.f32 %v1350_v28 }
 0x9c8   : > { %v1361_v30 = vpop.permute.xlu0 %1360 }
 0x9c9   : > { %v1366_v31 = vsel %vm820_vm5, %v1361_v30, 0 }
 0x9ca   : > { %3833 = vmatpush3.bf16.msra.mxu1 %v1366_v31 }
 0x9cb   : > { %3844 = vmatprep.subr.bf16.mxu1 %v4268_v17 }
 0x9cc   : > { %v1507_v32 = vpop.permute.xlu0 %1506 }
 0x9cd   : > { %3853 = vmatmul.mubr.msk.bf16.vlgmr.msra.gmra.mrb[24].mxu0 %vm692_vm3, %v1507_v32 }
 0x9ce   : > { %3864 = vmatprep.mubr.msk.bf16.mxu0 %vm4269_vm2, %v4268_v17 }
 0x9cf   : > { %v4138_v33 = vpop.eup %4137 }
 0x9d0   : > { %v1356_v34 = vmul.f32 %v4138_v33, %v4134_v20 }
 0x9d2   : > { %v1358_v35 = vpack.c.bf16 %v1356_v34, %v1356_v34 }
 0x9d4   : > { %3835 = vmatmul.mubr.msk.bf16.vlgmr.msra.gmra.mrb[32].mxu1 %vm692_vm3, %v1358_v35  ;;  %v684_v35 = vld [vmem:[%s4384_s21 + $0xc] sm:$0xf] }
 0x9d5   : > { %3846 = vmatprep.mubr.msk.bf16.mxu1 %vm4269_vm2, %v4268_v17  ;;  %3845 = vmatpush3.bf16.msra.mxu1 %v1461_v43 }
 0x9d6   : > { %3856 = vmatprep.subr.bf16.mxu1 %v4268_v17 }
 0xa0e   : > { %v1450_v36 = vpop.f32.mrb[20].mxu0 }
 0xa0f   : > { %v3842_v37 = vpop.f32.mrb[21].mxu0 }
 0xa10   : > { %v1453_v39 = vpop.f32.mrb[22].mxu0 }
 0xa11   : > { %v3843_v40 = vpop.f32.mrb[23].mxu0 }
 0xaa0   : > { %v1550_v44 = vpop.f32.mrb[24].mxu0 }
 0xaa1   : > { %v1606_v45 = vmul.f32 0.35355338, %v1550_v44  ;;  %v3854_v46 = vpop.f32.mrb[25].mxu0 }
 0xaa2   : > { %v1553_v48 = vpop.f32.mrb[26].mxu0 }
 0xaa3   : > { %v3855_v50 = vpop.f32.mrb[27].mxu0  ;;  %v1608_v51 = vadd.f32 %v1606_v45, %v4474_v49 }
 0xaa5   : > { %v1610_v52 = vsel %vm692_vm3, %v1608_v51, -inf }
 0xaa6   : > { %1611 = vmax.xlane.f32.xlu0 %v1610_v52 }
 0xaa7   : > { %v1402_v54 = vpop.f32.mrb[32].mxu1 }
 0xaa8   : > { %v1456_v55 = vpack.c.bf16 %v1450_v36, %v1402_v54  ;;  %v3836_v56 = vpop.f32.mrb[33].mxu1  ;;  %v1735_v36 = vsel %vm820_vm5, %v684_v35, 0 }
 0xaa9   : > { %v1405_v57 = vpop.f32.mrb[34].mxu1 }
 0xaaa   : > { %v3837_v59 = vpop.f32.mrb[35].mxu1  ;;  %3847 = vmatmul.mubr.msk.bf16.vlgmr.msra.gmra.mrb[36].mxu1 %vm692_vm3, %v1456_v55 }
 0xaab   : > { %3857 = vmatpush3.bf16.xpose.msra.mxu1 %v1564_v58  ;;  %3858 = vmatprep.mubr.msk.bf16.mxu1 %vm4269_vm2, %v4268_v17 }
 0xaac   : > { %3868 = vmatprep.subr.bf16.mxu1 %v4268_v17 }
 0xab2   : > { %3859 = vmatmul.mubr.msk.bf16.vlgmr.msra.gmra.mrb[40].mxu1 %vm692_vm3, %v1557_v60 }
 0xab3   : > { %3870 = vmatprep.mubr.msk.bf16.mxu1 %vm4269_vm2, %v4268_v17 }
 0xb33   : > { %v1612_v61 = vpop.xlane.xlu0 %1611 }
 0xb34   : > { %v1616_v62 = vsub.f32 %v1608_v51, %v1612_v61 }
 0xb36   : > { %v1618_v0 = vmul.f32 1.442695, %v1616_v62 }
 0xb38   : > { %4139 = vpow2.f32 %v1618_v0 }
 0xb42   : > { %v4140_v1 = vpop.eup %4139 }
 0xb43   : > { %v1622_v5 = vsel %vm692_vm3, %v4140_v1, 0.0 }
 0xb44   : > { %1623 = vadd.xlane.f32.xlu0 %v1622_v5 }
 0xb7d   : > { %v1497_v6 = vpop.f32.mrb[36].mxu1 }
 0xb7e   : > { %v1504_v7 = vadd.f32 %v1497_v6, %v4581_v63  ;;  %v3848_v8 = vpop.f32.mrb[37].mxu1 }
 0xb7f   : > { %v1500_v9 = vpop.f32.mrb[38].mxu1  ;;  %v4097_v8 = vld [vmem:[%s4394_s28] sm:$0xff]  }
 0xb80   : > { %v1505_v10 = vadd.f32 %v1500_v9, %v4583_v4  ;;  %v3849_v11 = vpop.f32.mrb[39].mxu1  ;;  %v4098_v9 = vld [vmem:[%s4394_s28 + $0x8] sm:$0xff]  }
 0xb81   : > { %v582_v11 = vld [vmem:[%s4988_s0 + $0x8] sm:$0xff] }
 0xb85   : > { %v1600_v12 = vpop.f32.mrb[40].mxu1 }
 0xb86   : > { %v1607_v13 = vmul.f32 0.35355338, %v1600_v12  ;;  %v3860_v14 = vpop.f32.mrb[41].mxu1 }
 0xb87   : > { %v1603_v15 = vpop.f32.mrb[42].mxu1  ;;  %v4100_v14 = vld [vmem:[%s4389_s24 + $0x8] sm:$0xff]  }
 0xb88   : > { %v3861_v16 = vpop.f32.mrb[43].mxu1  ;;  %v1609_v18 = vadd.f32 %v1607_v13, %v4474_v49  ;;  %v4099_v13 = vld [vmem:[%s4389_s24] sm:$0xff]  }
 0xb8a   : > { %v1613_v19 = vsel %vm692_vm3, %v1609_v18, -inf }
 0xb8b   : > { %1614 = vmax.xlane.f32.xlu1 %v1613_v19 }
 0xb9c   : > { %1682 = vrot.lane.b32.xlu1 %v4452_v41, %s4281_s30 }
 0xbd1   : > { %v1624_v25 = vpop.xlane.xlu0 %1623 }
 0xc18   : > { %v1615_v20 = vpop.xlane.xlu1 %1614 }
 0xc19   : > { %v1617_v63 = vsub.f32 %v1609_v18, %v1615_v20 }
 0xc1b   : > { %v1620_v21 = vmul.f32 1.442695, %v1617_v63 }
 0xc1c   : > { %v1683_v22 = vpop.permute.xlu1 %1682 }
 0xc1d   : > { %4141 = vpow2.f32 %v1620_v21  ;;  %v1688_v4 = vsel %vm820_vm5, %v1683_v22, 0  ;;  %v1810_v21 = vsub.s32 1, %v4440_v26 }
 0xc1e   : > { %3869 = vmatpush3.bf16.msra.mxu1 %v1688_v4  ;;  %4143 = vrcp.f32 %v1624_v25 }
 0xc1f   : > { %3880 = vmatprep.subr.bf16.mxu1 %v4268_v17 }
 0xc27   : > { %v4142_v23 = vpop.eup %4141 }
 0xc28   : > { %v1625_v24 = vsel %vm692_vm3, %v4142_v23, 0.0  ;;  %v4144_v27 = vpop.eup %4143 }
 0xc29   : > { %1626 = vadd.xlane.f32.xlu0 %v1625_v24  ;;  %v1630_v28 = vmul.f32 %v4144_v27, %v4140_v1 }
 0xc2b   : > { %v1632_v32 = vpack.c.bf16 %v1630_v28, %v1630_v28 }
 0xc3f   : > { %1634 = vrot.lane.b32.xlu0 %v4450_v38, %s4281_s30 }
 0xcb6   : > { %v1627_v41 = vpop.xlane.xlu0 %1626 }
 0xcb7   : > { %4145 = vrcp.f32 %v1627_v41 }
 0xcba   : > { %v1635_v30 = vpop.permute.xlu0 %1634 }
 0xcbb   : > { %v1640_v31 = vsel %vm820_vm5, %v1635_v30, 0 }
 0xcbc   : > { %3863 = vmatpush3.bf16.msra.mxu0 %v1640_v31 }
 0xcbd   : > { %3874 = vmatprep.subr.bf16.mxu0 %v4268_v17 }
 0xcbf   : > { %3865 = vmatmul.mubr.msk.bf16.vlgmr.msra.gmra.mrb[28].mxu0 %vm692_vm3, %v1632_v32 }
 0xcc0   : > { %3876 = vmatprep.mubr.msk.bf16.mxu0 %vm4269_vm2, %v4268_v17  ;;  %3875 = vmatpush3.bf16.msra.mxu0 %v1735_v36 }
 0xcc1   : > { %v4146_v38 = vpop.eup %4145  ;;  %3888 = vmatprep.subr.bf16.mxu0 %v4268_v17 }
 0xcc2   : > { %v1631_v33 = vmul.f32 %v4146_v38, %v4142_v23  ;;  %v1811_v23 = vrot.slane %v4444_v29, %v1810_v21 }
 0xcc4   : > { %v1633_v34 = vpack.c.bf16 %v1631_v33, %v1631_v33 }
 0xcc6   : > { %3871 = vmatmul.mubr.msk.bf16.vlgmr.msra.gmra.mrb[44].mxu1 %vm692_vm3, %v1633_v34 }
 0xcc7   : > { %3884 = vmatprep.mubr.msk.bf16.mxu1 %vm4269_vm2, %v4268_v17  ;;  %3881 = vmatpush3.bf16.msra.mxu1 %v4099_v13 }
 0xcc8   : > { %3882 = vmatprep.subr.bf16.mxu1 %v4268_v17 }
 0xccb   : > { %3883 = vmatpush3.bf16.msra.mxu1 %v4100_v14 }
 0xccc   : > { %3896 = vmatprep.subr.bf16.mxu1 %v4268_v17 }
 0xd92   : > { %v1676_v37 = vpop.f32.mrb[28].mxu0 }
 0xd93   : > { %v3866_v39 = vpop.f32.mrb[29].mxu0 }
 0xd94   : > { %v1679_v40 = vpop.f32.mrb[30].mxu0 }
 0xd95   : > { %v3867_v42 = vpop.f32.mrb[31].mxu0 }
 0xd99   : > { %v1724_v43 = vpop.f32.mrb[44].mxu1 }
 0xd9a   : > { %v1730_v44 = vpack.c.bf16 %v1724_v43, %v1676_v37  ;;  %v3872_v45 = vpop.f32.mrb[45].mxu1 }
 0xd9b   : > { %v1727_v46 = vpop.f32.mrb[46].mxu1 }
 0xd9c   : > { %v3873_v48 = vpop.f32.mrb[47].mxu1  ;;  %3877 = vmatmul.mubr.msk.bf16.vlgmr.msra.gmra.mrb[32].mxu0 %vm692_vm3, %v1730_v44 }
 0xd9d   : > { %3892 = vmatprep.mubr.msk.bf16.mxu0 %vm4269_vm2, %v4268_v17  ;;  %3889 = vmatpush3.bf16.msra.mxu0 %v4097_v8 }
 0xd9e   : > { %3890 = vmatprep.subr.bf16.mxu0 %v4268_v17 }
 0xda1   : > { %3891 = vmatpush3.bf16.msra.mxu0 %v4098_v9 }
 0xda2   : > { %3902 = vmatprep.subr.bf16.mxu0 %v4268_v17 }
 0xe6f   : > { %v1771_v50 = vpop.f32.mrb[32].mxu0 }
 0xe70   : > { %v1778_v51 = vadd.f32 %v1771_v50, %v1504_v7  ;;  %v3878_v52 = vpop.f32.mrb[33].mxu0 }
 0xe71   : > { %v1774_v53 = vpop.f32.mrb[34].mxu0 }
 0xe72   : > { %v4644_v54 = vadd.f32 %v1778_v51, %v4418_v2  ;;  %v1779_v55 = vadd.f32 %v1774_v53, %v1505_v10  ;;  %v3879_v56 = vpop.f32.mrb[35].mxu0  ;;  %v581_v10 = vld [vmem:[%s4988_s0] sm:$0xff] }
 0xe73   : > { %v583_v12 = vpack.c.bf16 %v582_v11, %v581_v10 }
 0xe74   : > { %v4647_v57 = vadd.f32 %v1779_v55, %v4420_v3  ;;  %v1782_v58 = vsel %vm585_vm1, %v4644_v54, 0.0 }
 0xe75   : > { %1783 = vadd.xlane.f32.xlu1 %v1782_v58  ;;  %3893 = vmatmul.mubr.msk.bf16.vlgmr.msra.gmra.mrb[36].mxu0 %vm585_vm1, %v583_v12 }
 0xe76   : > { %v1785_v59 = vsel %vm585_vm1, %v4647_v57, 0.0  ;;  %3904 = vmatprep.mubr.msk.bf16.mxu0 %vm4269_vm2, %v4268_v17 }
 0xe77   : > { %1786 = vadd.xlane.f32.xlu0 %v1785_v59 }
 0xf02   : > { %v1784_v60 = vpop.xlane.xlu1 %1783 }
 0xf03   : > { %v1788_v61 = vmul.f32 0.03125, %v1784_v60 }
 0xf04   : > { %v1787_v62 = vpop.xlane.xlu0 %1786 }
 0xf05   : > { %v1790_v2 = vsub.f32 %v4644_v54, %v1788_v61  ;;  %v1789_v0 = vmul.f32 0.03125, %v1787_v62 }
 0xf07   : > { %v1791_v1 = vsub.f32 %v4647_v57, %v1789_v0  ;;  %v1792_v3 = vmul.f32 %v1790_v2, %v1790_v2 }
 0xf09   : > { %v1794_v5 = vsel %vm585_vm1, %v1792_v3, 0.0  ;;  %v1793_v6 = vmul.f32 %v1791_v1, %v1791_v1 }
 0xf0a   : > { %1795 = vadd.xlane.f32.xlu0 %v1794_v5 }
 0xf0b   : > { %v1797_v7 = vsel %vm585_vm1, %v1793_v6, 0.0 }
 0xf0c   : > { %1798 = vadd.xlane.f32.xlu1 %v1797_v7 }
 0xf48   : > { %v1929_v30 = vpop.f32.mrb[36].mxu0 }
 0xf49   : > { %v4679_v31 = vpack.c.bf16 %v1929_v30, %v1929_v30  ;;  %v3894_v32 = vpop.f32.mrb[37].mxu0 }
 0xf4a   : > { %v1932_v38 = vpop.f32.mrb[38].mxu0 }
 0xf4b   : > { %v4681_v33 = vpack.c.bf16 %v1932_v38, %v1932_v38  ;;  %v3895_v34 = vpop.f32.mrb[39].mxu0  ;;  %v1955_v29 = vsel %vm692_vm3, %v4679_v31, 0 }
 0xf4d   : > { %v2001_v35 = vsel %vm692_vm3, %v4681_v33, 0 }
 0xf4e   : > { %3903 = vmatpush3.bf16.xpose.msra.mxu0 %v2001_v35 }
 0xf4f   : > { %3914 = vmatprep.subr.bf16.mxu0 %v4268_v17 }
 0xf97   : > { %v1796_v15 = vpop.xlane.xlu0 %1795 }
 0xf98   : > { %v1800_v16 = vmul.f32 0.03125, %v1796_v15 }
 0xf99   : > { %v1799_v18 = vpop.xlane.xlu1 %1798 }
 0xf9a   : > { %v1802_v19 = vadd.f32 1e-05, %v1800_v16  ;;  %v1801_v20 = vmul.f32 0.03125, %v1799_v18 }
 0xf9c   : > { %4147 = vrsqrt.f32 %v1802_v19  ;;  %v1803_v63 = vadd.f32 1e-05, %v1801_v20 }
 0xf9e   : > { %4149 = vrsqrt.f32 %v1803_v63 }
 0xfa6   : > { %v4148_v22 = vpop.eup %4147 }
 0xfa7   : > { %v1806_v4 = vmul.f32 %v4148_v22, %v1790_v2 }
 0xfa8   : > { %v4150_v24 = vpop.eup %4149 }
 0xfa9   : > { %v1807_v25 = vmul.f32 %v4150_v24, %v1791_v1  ;;  %v1812_v27 = vmul.f32 %v1811_v23, %v1806_v4 }
 0xfab   : > { %v1813_v41 = vmul.f32 %v1811_v23, %v1807_v25 }
 0xfad   : > { %v1814_v28 = vpack.c.bf16 %v1813_v41, %v1812_v27 }
 0xfaf   : > { %3885 = vmatmul.mubr.msk.bf16.vlgmr.msra.gmra.mrb[48].mxu1 %vm585_vm1, %v1814_v28 }
 0xfb0   : > { %3898 = vmatprep.mubr.msk.bf16.mxu1 %vm4269_vm2, %v4268_v17  ;;  %3897 = vmatpush3.bf16.xpose.msra.mxu1 %v1955_v29 }
 0xfb1   : > { %3908 = vmatprep.subr.bf16.mxu1 %v4268_v17 }
0x1082   : > { %v1868_v36 = vpop.f32.mrb[48].mxu1 }
0x1083   : > { %v4689_v37 = vpack.c.bf16 %v1868_v36, %v1868_v36  ;;  %v3886_v39 = vpop.f32.mrb[49].mxu1 }
0x1084   : > { %v1871_v40 = vpop.f32.mrb[50].mxu1 }
0x1085   : > { %v4691_v42 = vpack.c.bf16 %v1871_v40, %v1871_v40  ;;  %v3887_v43 = vpop.f32.mrb[51].mxu1  ;;  %3899 = vmatmul.mubr.msk.bf16.vlgmr.msra.gmra.mrb[52].mxu1 %vm692_vm3, %v4689_v37 }
0x1086   : > { %3910 = vmatprep.mubr.msk.bf16.mxu1 %vm4269_vm2, %v4268_v17 }
0x1087   : > { %3905 = vmatmul.mubr.msk.bf16.vlgmr.msra.gmra.mrb[40].mxu0 %vm692_vm3, %v4691_v42 }
0x1088   : > { %3916 = vmatprep.mubr.msk.bf16.mxu0 %vm4269_vm2, %v4268_v17 }
0x1158   : > { %v1991_v44 = vpop.f32.mrb[52].mxu1 }
0x1159   : > { %v2043_v45 = vmul.f32 0.35355338, %v1991_v44  ;;  %v3900_v46 = vpop.f32.mrb[53].mxu1 }
0x115a   : > { %v1994_v48 = vpop.f32.mrb[54].mxu1  ;;  %v2037_v50 = vpop.f32.mrb[40].mxu0 }
0x115b   : > { %v2044_v51 = vmul.f32 0.35355338, %v2037_v50  ;;  %v3901_v52 = vpop.f32.mrb[55].mxu1  ;;  %v3906_v53 = vpop.f32.mrb[41].mxu0  ;;  %v2045_v55 = vadd.f32 %v2043_v45, %v4474_v49 }
0x115c   : > { %v2040_v56 = vpop.f32.mrb[42].mxu0 }
0x115d   : > { %v3907_v58 = vpop.f32.mrb[43].mxu0  ;;  %v2047_v59 = vsel %vm692_vm3, %v2045_v55, -inf  ;;  %v2046_v60 = vadd.f32 %v2044_v51, %v4474_v49 }
0x115e   : > { %2048 = vmax.xlane.f32.xlu0 %v2047_v59 }
0x115f   : > { %v2050_v61 = vsel %vm692_vm3, %v2046_v60, -inf }
0x1160   : > { %2051 = vmax.xlane.f32.xlu1 %v2050_v61 }
0x1171   : > { %2119 = vrot.lane.b32.xlu1 %v4681_v33, %s4270_s1 }
0x1175   : > { %2170 = vrot.lane.b32.xlu1 %v4679_v31, %s4274_s29 }
0x11eb   : > { %v2049_v62 = vpop.xlane.xlu0 %2048 }
0x11ec   : > { %v2053_v2 = vsub.f32 %v2045_v55, %v2049_v62 }
0x11ed   : > { %v2052_v0 = vpop.xlane.xlu1 %2051 }
0x11ee   : > { %v2055_v1 = vmul.f32 1.442695, %v2053_v2  ;;  %v2054_v3 = vsub.f32 %v2046_v60, %v2052_v0 }
0x11f0   : > { %4151 = vpow2.f32 %v2055_v1  ;;  %v2057_v5 = vmul.f32 1.442695, %v2054_v3 }
0x11f1   : > { %v2120_v6 = vpop.permute.xlu1 %2119 }
0x11f2   : > { %4153 = vpow2.f32 %v2057_v5  ;;  %v2125_v7 = vsel %vm820_vm5, %v2120_v6, 0 }
0x11f3   : > { %3915 = vmatpush3.bf16.msra.mxu0 %v2125_v7 }
0x11f4   : > { %3926 = vmatprep.subr.bf16.mxu0 %v4268_v17 }
0x11f5   : > { %v2171_v12 = vpop.permute.xlu1 %2170 }
0x11f6   : > { %v2176_v4 = vsel %vm692_vm3, %v2171_v12, 0 }
0x11fa   : > { %v4152_v8 = vpop.eup %4151 }
0x11fb   : > { %v2059_v9 = vsel %vm692_vm3, %v4152_v8, 0.0 }
0x11fc   : > { %v4154_v10 = vpop.eup %4153  ;;  %2060 = vadd.xlane.f32.xlu0 %v2059_v9 }
0x11fd   : > { %v2062_v11 = vsel %vm692_vm3, %v4154_v10, 0.0 }
0x11fe   : > { %2063 = vadd.xlane.f32.xlu1 %v2062_v11 }
0x120f   : > { %2220 = vrot.lane.b32.xlu1 %v4681_v33, %s4274_s29 }
0x1212   : > { %2071 = vrot.lane.b32.xlu0 %v4679_v31, %s4270_s1 }
0x1213   : > { %2218 = vrot.lane.b32.xlu1 %v4691_v42, %s4274_s29 }
0x1216   : > { %2168 = vrot.lane.b32.xlu0 %v4689_v37, %s4274_s29 }
0x1289   : > { %v2061_v13 = vpop.xlane.xlu0 %2060 }
0x128a   : > { %4155 = vrcp.f32 %v2061_v13 }
0x128b   : > { %v2064_v14 = vpop.xlane.xlu1 %2063 }
0x128c   : > { %4157 = vrcp.f32 %v2064_v14  ;;  %v1938_v14 = vld [vmem:[%s4399_s16 + $0x4] sm:$0xf] }
0x128d   : > { %v2072_v15 = vpop.permute.xlu0 %2071 }
0x128e   : > { %v2077_v16 = vsel %vm820_vm5, %v2072_v15, 0 }
0x128f   : > { %3909 = vmatpush3.bf16.msra.mxu1 %v2077_v16  ;;  %v2221_v22 = vpop.permute.xlu1 %2220 }
0x1290   : > { %3920 = vmatprep.subr.bf16.mxu1 %v4268_v17  ;;  %v2226_v24 = vsel %vm692_vm3, %v2221_v22, 0 }
0x1291   : > { %v2169_v25 = vpop.permute.xlu0 %2168 }
0x1293   : > { %v2219_v27 = vpop.permute.xlu1 %2218 }
0x1294   : > { %v4156_v18 = vpop.eup %4155 }
0x1295   : > { %v2067_v19 = vmul.f32 %v4156_v18, %v4152_v8  ;;  %v2397_v18 = vsel %vm820_vm5, %v1938_v14, 0 }
0x1296   : > { %v4158_v20 = vpop.eup %4157 }
0x1297   : > { %v2068_v63 = vmul.f32 %v4158_v20, %v4154_v10  ;;  %v2069_v21 = vpack.c.bf16 %v2067_v19, %v2067_v19  ;;  %v1937_v20 = vld [vmem:[%s4399_s16] sm:$0xf] }
0x1298   : > { %v2444_v22 = vsel %vm820_vm5, %v1937_v20, 0 }
0x1299   : > { %3911 = vmatmul.mubr.msk.bf16.vlgmr.msra.gmra.mrb[56].mxu1 %vm692_vm3, %v2069_v21  ;;  %v2070_v23 = vpack.c.bf16 %v2068_v63, %v2068_v63 }
0x129a   : > { %3921 = vmatpush3.bf16.xpose.msra.mxu1 %v2176_v4  ;;  %3922 = vmatprep.mubr.msk.bf16.mxu1 %vm4269_vm2, %v4268_v17 }
0x129b   : > { %3917 = vmatmul.mubr.msk.bf16.vlgmr.msra.gmra.mrb[44].mxu0 %vm692_vm3, %v2070_v23  ;;  %3932 = vmatprep.subr.bf16.mxu1 %v4268_v17 }
0x129c   : > { %3927 = vmatpush3.bf16.xpose.msra.mxu0 %v2226_v24  ;;  %3928 = vmatprep.mubr.msk.bf16.mxu0 %vm4269_vm2, %v4268_v17 }
0x129d   : > { %3938 = vmatprep.subr.bf16.mxu0 %v4268_v17 }
0x12a1   : > { %3923 = vmatmul.mubr.msk.bf16.vlgmr.msra.gmra.mrb[60].mxu1 %vm692_vm3, %v2169_v25 }
0x12a2   : > { %3934 = vmatprep.mubr.msk.bf16.mxu1 %vm4269_vm2, %v4268_v17 }
0x12a3   : > { %3929 = vmatmul.mubr.msk.bf16.vlgmr.msra.gmra.mrb[48].mxu0 %vm692_vm3, %v2219_v27 }
0x12a4   : > { %3940 = vmatprep.mubr.msk.bf16.mxu0 %vm4269_vm2, %v4268_v17 }
0x136c   : > { %v4739_v41 = vpop.f32.mrb[56].mxu1 }
0x136d   : > { %v3912_v28 = vpop.f32.mrb[57].mxu1 }
0x136e   : > { %v2116_v30 = vpop.f32.mrb[58].mxu1  ;;  %v4741_v32 = vpop.f32.mrb[44].mxu0 }
0x136f   : > { %v2167_v38 = vpack.c.bf16 %v4741_v32, %v4739_v41  ;;  %v3913_v34 = vpop.f32.mrb[59].mxu1  ;;  %v3918_v29 = vpop.f32.mrb[45].mxu0 }
0x1370   : > { %v2164_v35 = vpop.f32.mrb[46].mxu0 }
0x1371   : > { %v3919_v36 = vpop.f32.mrb[47].mxu0 }
0x1374   : > { %v2212_v39 = vpop.f32.mrb[60].mxu1 }
0x1375   : > { %v2268_v40 = vmul.f32 0.35355338, %v2212_v39  ;;  %v3924_v43 = vpop.f32.mrb[61].mxu1 }
0x1376   : > { %v2215_v44 = vpop.f32.mrb[62].mxu1  ;;  %v2262_v45 = vpop.f32.mrb[48].mxu0 }
0x1377   : > { %v2269_v46 = vmul.f32 0.35355338, %v2262_v45  ;;  %v3925_v48 = vpop.f32.mrb[63].mxu1  ;;  %v3930_v50 = vpop.f32.mrb[49].mxu0  ;;  %v2270_v51 = vadd.f32 %v2268_v40, %v4474_v49 }
0x1378   : > { %v2265_v52 = vpop.f32.mrb[50].mxu0 }
0x1379   : > { %v3931_v53 = vpop.f32.mrb[51].mxu0  ;;  %v2272_v55 = vsel %vm692_vm3, %v2270_v51, -inf  ;;  %v2271_v56 = vadd.f32 %v2269_v46, %v4474_v49 }
0x137a   : > { %2273 = vmax.xlane.f32.xlu0 %v2272_v55 }
0x137b   : > { %v2275_v58 = vsel %vm692_vm3, %v2271_v56, -inf }
0x137c   : > { %2276 = vmax.xlane.f32.xlu1 %v2275_v58 }
0x138d   : > { %2344 = vrot.lane.b32.xlu1 %v4681_v33, %s4273_s27 }
0x1391   : > { %2489 = vrot.lane.b32.xlu1 %v4679_v31, %s4277_s20 }
0x1395   : > { %2539 = vrot.lane.b32.xlu1 %v4681_v33, %s4277_s20 }
0x1399   : > { %2537 = vrot.lane.b32.xlu1 %v4691_v42, %s4277_s20 }
0x1407   : > { %v2274_v59 = vpop.xlane.xlu0 %2273 }
0x1408   : > { %v2278_v60 = vsub.f32 %v2270_v51, %v2274_v59 }
0x1409   : > { %v2277_v61 = vpop.xlane.xlu1 %2276 }
0x140a   : > { %v2280_v62 = vmul.f32 1.442695, %v2278_v60  ;;  %v2279_v2 = vsub.f32 %v2271_v56, %v2277_v61 }
0x140c   : > { %4159 = vpow2.f32 %v2280_v62  ;;  %v2282_v0 = vmul.f32 1.442695, %v2279_v2 }
0x140d   : > { %v2345_v1 = vpop.permute.xlu1 %2344 }
0x140e   : > { %4161 = vpow2.f32 %v2282_v0  ;;  %v2350_v3 = vsel %vm820_vm5, %v2345_v1, 0 }
0x140f   : > { %3939 = vmatpush3.bf16.msra.mxu0 %v2350_v3 }
0x1410   : > { %3950 = vmatprep.subr.bf16.mxu0 %v4268_v17 }
0x1411   : > { %v2490_v4 = vpop.permute.xlu1 %2489 }
0x1412   : > { %v2495_v35 = vsel %vm692_vm3, %v2490_v4, 0 }
0x1415   : > { %v2540_v23 = vpop.permute.xlu1 %2539 }
0x1416   : > { %v4160_v5 = vpop.eup %4159  ;;  %v2545_v24 = vsel %vm692_vm3, %v2540_v23, 0 }
0x1417   : > { %v2284_v6 = vsel %vm692_vm3, %v4160_v5, 0.0 }
0x1418   : > { %v4162_v7 = vpop.eup %4161  ;;  %2285 = vadd.xlane.f32.xlu0 %v2284_v6 }
0x1419   : > { %v2287_v8 = vsel %vm692_vm3, %v4162_v7, 0.0  ;;  %v2538_v25 = vpop.permute.xlu1 %2537 }
0x141c   : > { %2288 = vadd.xlane.f32.xlu0 %v2287_v8 }
0x1432   : > { %2296 = vrot.lane.b32.xlu0 %v4679_v31, %s4273_s27 }
0x1436   : > { %2487 = vrot.lane.b32.xlu0 %v4689_v37, %s4277_s20 }
0x14a5   : > { %v2286_v9 = vpop.xlane.xlu0 %2285 }
0x14a6   : > { %4163 = vrcp.f32 %v2286_v9 }
0x14a9   : > { %v2289_v10 = vpop.xlane.xlu0 %2288 }
0x14aa   : > { %4165 = vrcp.f32 %v2289_v10 }
0x14ad   : > { %v2297_v11 = vpop.permute.xlu0 %2296 }
0x14ae   : > { %v2302_v12 = vsel %vm820_vm5, %v2297_v11, 0 }
0x14af   : > { %3933 = vmatpush3.bf16.msra.mxu1 %v2302_v12 }
0x14b0   : > { %v4164_v13 = vpop.eup %4163  ;;  %3944 = vmatprep.subr.bf16.mxu1 %v4268_v17 }
0x14b1   : > { %v2292_v15 = vmul.f32 %v4164_v13, %v4160_v5  ;;  %v2488_v43 = vpop.permute.xlu0 %2487 }
0x14b3   : > { %v2294_v16 = vpack.c.bf16 %v2292_v15, %v2292_v15 }
0x14b4   : > { %v4166_v19 = vpop.eup %4165 }
0x14b5   : > { %v2293_v63 = vmul.f32 %v4166_v19, %v4162_v7  ;;  %3935 = vmatmul.mubr.msk.bf16.vlgmr.msra.gmra.mrb[64].mxu1 %vm692_vm3, %v2294_v16 }
0x14b6   : > { %3945 = vmatpush3.bf16.msra.mxu1 %v2397_v18  ;;  %3946 = vmatprep.mubr.msk.bf16.mxu1 %vm4269_vm2, %v4268_v17 }
0x14b7   : > { %v2295_v21 = vpack.c.bf16 %v2293_v63, %v2293_v63  ;;  %3956 = vmatprep.subr.bf16.mxu1 %v4268_v17 }
0x14b9   : > { %3941 = vmatmul.mubr.msk.bf16.vlgmr.msra.gmra.mrb[52].mxu0 %vm692_vm3, %v2295_v21 }
0x14ba   : > { %3951 = vmatpush3.bf16.msra.mxu0 %v2444_v22  ;;  %3952 = vmatprep.mubr.msk.bf16.mxu0 %vm4269_vm2, %v4268_v17 }
0x14bb   : > { %3962 = vmatprep.subr.bf16.mxu0 %v4268_v17 }
0x14c1   : > { %3953 = vmatmul.mubr.msk.bf16.vlgmr.msra.gmra.mrb[56].mxu0 %vm692_vm3, %v2167_v38 }
0x14c2   : > { %3964 = vmatprep.mubr.msk.bf16.mxu0 %vm4269_vm2, %v4268_v17 }
0x14c3   : > { %3963 = vmatpush3.bf16.xpose.msra.mxu0 %v2545_v24 }
0x14c4   : > { %3974 = vmatprep.subr.bf16.mxu0 %v4268_v17 }
0x14ca   : > { %3965 = vmatmul.mubr.msk.bf16.vlgmr.msra.gmra.mrb[60].mxu0 %vm692_vm3, %v2538_v25 }
0x14cb   : > { %3976 = vmatprep.mubr.msk.bf16.mxu0 %vm4269_vm2, %v4268_v17 }
0x1588   : > { %v2338_v27 = vpop.f32.mrb[64].mxu1 }
0x1589   : > { %v3936_v28 = vpop.f32.mrb[65].mxu1 }
0x158a   : > { %v2341_v30 = vpop.f32.mrb[66].mxu1 }
0x158b   : > { %v3937_v41 = vpop.f32.mrb[67].mxu1 }
0x158c   : > { %v2386_v32 = vpop.f32.mrb[52].mxu0 }
0x158d   : > { %v2392_v38 = vpack.c.bf16 %v2386_v32, %v2338_v27  ;;  %v3942_v34 = vpop.f32.mrb[53].mxu0 }
0x158e   : > { %v2389_v29 = vpop.f32.mrb[54].mxu0 }
0x158f   : > { %v3943_v36 = vpop.f32.mrb[55].mxu0  ;;  %3947 = vmatmul.mubr.msk.bf16.vlgmr.msra.gmra.mrb[68].mxu1 %vm692_vm3, %v2392_v38 }
0x1590   : > { %3957 = vmatpush3.bf16.xpose.msra.mxu1 %v2495_v35  ;;  %3958 = vmatprep.mubr.msk.bf16.mxu1 %vm4269_vm2, %v4268_v17  ;;  %v1939_v35 = vld [vmem:[%s4399_s16 + $0x8] sm:$0xf] }
0x1591   : > { %3968 = vmatprep.subr.bf16.mxu1 %v4268_v17  ;;  %v2716_v36 = vsel %vm820_vm5, %v1939_v35, 0 }
0x1594   : > { %v2480_v39 = vpop.f32.mrb[56].mxu0 }
0x1595   : > { %v3954_v40 = vpop.f32.mrb[57].mxu0 }
0x1596   : > { %v2483_v44 = vpop.f32.mrb[58].mxu0 }
0x1597   : > { %v3955_v45 = vpop.f32.mrb[59].mxu0  ;;  %3959 = vmatmul.mubr.msk.bf16.vlgmr.msra.gmra.mrb[72].mxu1 %vm692_vm3, %v2488_v43 }
0x1598   : > { %3970 = vmatprep.mubr.msk.bf16.mxu1 %vm4269_vm2, %v4268_v17 }
0x159d   : > { %v2581_v46 = vpop.f32.mrb[60].mxu0 }
0x159e   : > { %v2588_v48 = vmul.f32 0.35355338, %v2581_v46  ;;  %v3966_v50 = vpop.f32.mrb[61].mxu0 }
0x159f   : > { %v2584_v51 = vpop.f32.mrb[62].mxu0 }
0x15a0   : > { %v3967_v52 = vpop.f32.mrb[63].mxu0  ;;  %v2590_v53 = vadd.f32 %v2588_v48, %v4474_v49 }
0x15a2   : > { %v2594_v55 = vsel %vm692_vm3, %v2590_v53, -inf }
0x15a3   : > { %2595 = vmax.xlane.f32.xlu1 %v2594_v55 }
0x15b4   : > { %2663 = vrot.lane.b32.xlu1 %v4681_v33, %s4276_s17 }
0x15b8   : > { %2763 = vrot.lane.b32.xlu1 %v4679_v31, %s4280_s25 }
0x15bc   : > { %2813 = vrot.lane.b32.xlu1 %v4681_v33, %s4280_s25 }
0x15c0   : > { %2811 = vrot.lane.b32.xlu1 %v4691_v42, %s4280_s25 }
0x1630   : > { %v2596_v56 = vpop.xlane.xlu1 %2595 }
0x1631   : > { %v2598_v60 = vsub.f32 %v2590_v53, %v2596_v56 }
0x1633   : > { %v2601_v61 = vmul.f32 1.442695, %v2598_v60 }
0x1634   : > { %v2664_v58 = vpop.permute.xlu1 %2663 }
0x1635   : > { %v2669_v59 = vsel %vm820_vm5, %v2664_v58, 0  ;;  %4167 = vpow2.f32 %v2601_v61 }
0x1636   : > { %3975 = vmatpush3.bf16.msra.mxu0 %v2669_v59 }
0x1637   : > { %3986 = vmatprep.subr.bf16.mxu0 %v4268_v17 }
0x1638   : > { %v2764_v22 = vpop.permute.xlu1 %2763 }
0x1639   : > { %v2769_v23 = vsel %vm692_vm3, %v2764_v22, 0 }
0x163c   : > { %v2814_v50 = vpop.permute.xlu1 %2813 }
0x163d   : > { %v2819_v56 = vsel %vm692_vm3, %v2814_v50, 0 }
0x163f   : > { %v4168_v12 = vpop.eup %4167 }
0x1640   : > { %v2606_v13 = vsel %vm692_vm3, %v4168_v12, 0.0  ;;  %v2812_v59 = vpop.permute.xlu1 %2811 }
0x1662   : > { %v2433_v62 = vpop.f32.mrb[68].mxu1 }
0x1663   : > { %v4810_v2 = vadd.f32 %v2480_v39, %v2433_v62  ;;  %v3948_v0 = vpop.f32.mrb[69].mxu1 }
0x1664   : > { %v2436_v1 = vpop.f32.mrb[70].mxu1 }
0x1665   : > { %v4812_v3 = vadd.f32 %v2483_v44, %v2436_v1  ;;  %v3949_v5 = vpop.f32.mrb[71].mxu1 }
0x166a   : > { %v2531_v6 = vpop.f32.mrb[72].mxu1 }
0x166b   : > { %v2587_v42 = vmul.f32 0.35355338, %v2531_v6  ;;  %v3960_v7 = vpop.f32.mrb[73].mxu1 }
0x166c   : > { %v2534_v8 = vpop.f32.mrb[74].mxu1 }
0x166d   : > { %v3961_v9 = vpop.f32.mrb[75].mxu1  ;;  %v2589_v10 = vadd.f32 %v2587_v42, %v4474_v49 }
0x166f   : > { %v2591_v11 = vsel %vm692_vm3, %v2589_v10, -inf }
0x1670   : > { %2592 = vmax.xlane.f32.xlu0 %v2591_v11 }
0x1674   : > { %2607 = vadd.xlane.f32.xlu0 %v2606_v13 }
0x16fd   : > { %v2593_v14 = vpop.xlane.xlu0 %2592 }
0x16fe   : > { %v2597_v15 = vsub.f32 %v2589_v10, %v2593_v14 }
0x1700   : > { %v2599_v16 = vmul.f32 1.442695, %v2597_v15 }
0x1701   : > { %v2608_v18 = vpop.xlane.xlu0 %2607 }
0x1702   : > { %4169 = vpow2.f32 %v2599_v16 }
0x1703   : > { %4171 = vrcp.f32 %v2608_v18 }
0x170c   : > { %v4170_v19 = vpop.eup %4169 }
0x170d   : > { %v4172_v20 = vpop.eup %4171  ;;  %v2603_v63 = vsel %vm692_vm3, %v4170_v19, 0.0 }
0x170e   : > { %v2612_v21 = vmul.f32 %v4172_v20, %v4168_v12  ;;  %2604 = vadd.xlane.f32.xlu0 %v2603_v63 }
0x1710   : > { %v2614_v4 = vpack.c.bf16 %v2612_v21, %v2612_v21 }
0x1712   : > { %3977 = vmatmul.mubr.msk.bf16.vlgmr.msra.gmra.mrb[64].mxu0 %vm692_vm3, %v2614_v4 }
0x1713   : > { %3987 = vmatpush3.bf16.xpose.msra.mxu0 %v2769_v23  ;;  %3988 = vmatprep.mubr.msk.bf16.mxu0 %vm4269_vm2, %v4268_v17 }
0x1714   : > { %3998 = vmatprep.subr.bf16.mxu0 %v4268_v17 }
0x1724   : > { %2615 = vrot.lane.b32.xlu0 %v4679_v31, %s4276_s17 }
0x1728   : > { %2761 = vrot.lane.b32.xlu0 %v4689_v37, %s4280_s25 }
0x179b   : > { %v2605_v24 = vpop.xlane.xlu0 %2604 }
0x179c   : > { %4173 = vrcp.f32 %v2605_v24 }
0x179f   : > { %v2616_v25 = vpop.permute.xlu0 %2615 }
0x17a0   : > { %v2621_v27 = vsel %vm820_vm5, %v2616_v25, 0 }
0x17a1   : > { %3969 = vmatpush3.bf16.msra.mxu1 %v2621_v27 }
0x17a2   : > { %3980 = vmatprep.subr.bf16.mxu1 %v4268_v17 }
0x17a3   : > { %v2762_v28 = vpop.permute.xlu0 %2761 }
0x17a4   : > { %3989 = vmatmul.mubr.msk.bf16.vlgmr.msra.gmra.mrb[68].mxu0 %vm692_vm3, %v2762_v28 }
0x17a5   : > { %4000 = vmatprep.mubr.msk.bf16.mxu0 %vm4269_vm2, %v4268_v17 }
0x17a6   : > { %v4174_v30 = vpop.eup %4173 }
0x17a7   : > { %v2611_v41 = vmul.f32 %v4174_v30, %v4170_v19  ;;  %v1940_v30 = vld [vmem:[%s4399_s16 + $0xc] sm:$0xf] }
0x17a9   : > { %v2613_v32 = vpack.c.bf16 %v2611_v41, %v2611_v41  ;;  %v2990_v41 = vsel %vm820_vm5, %v1940_v30, 0 }
0x17ab   : > { %3971 = vmatmul.mubr.msk.bf16.vlgmr.msra.gmra.mrb[76].mxu1 %vm692_vm3, %v2613_v32 }
0x17ac   : > { %3982 = vmatprep.mubr.msk.bf16.mxu1 %vm4269_vm2, %v4268_v17  ;;  %3981 = vmatpush3.bf16.msra.mxu1 %v2716_v36 }
0x17ad   : > { %3992 = vmatprep.subr.bf16.mxu1 %v4268_v17 }
0x17e5   : > { %v2705_v37 = vpop.f32.mrb[64].mxu0 }
0x17e6   : > { %v3978_v38 = vpop.f32.mrb[65].mxu0 }
0x17e7   : > { %v2708_v34 = vpop.f32.mrb[66].mxu0 }
0x17e8   : > { %v3979_v29 = vpop.f32.mrb[67].mxu0 }
0x1877   : > { %v2805_v39 = vpop.f32.mrb[68].mxu0 }
0x1878   : > { %v2861_v40 = vmul.f32 0.35355338, %v2805_v39  ;;  %v3990_v43 = vpop.f32.mrb[69].mxu0 }
0x1879   : > { %v2808_v44 = vpop.f32.mrb[70].mxu0 }
0x187a   : > { %v3991_v45 = vpop.f32.mrb[71].mxu0  ;;  %v2863_v46 = vadd.f32 %v2861_v40, %v4474_v49 }
0x187c   : > { %v2865_v48 = vsel %vm692_vm3, %v2863_v46, -inf }
0x187d   : > { %2866 = vmax.xlane.f32.xlu0 %v2865_v48 }
0x187e   : > { %v2657_v51 = vpop.f32.mrb[76].mxu1 }
0x187f   : > { %v2711_v52 = vpack.c.bf16 %v2705_v37, %v2657_v51  ;;  %v3972_v53 = vpop.f32.mrb[77].mxu1 }
0x1880   : > { %v2660_v55 = vpop.f32.mrb[78].mxu1 }
0x1881   : > { %v3973_v58 = vpop.f32.mrb[79].mxu1  ;;  %3983 = vmatmul.mubr.msk.bf16.vlgmr.msra.gmra.mrb[80].mxu1 %vm692_vm3, %v2711_v52 }
0x1882   : > { %3993 = vmatpush3.bf16.xpose.msra.mxu1 %v2819_v56  ;;  %3994 = vmatprep.mubr.msk.bf16.mxu1 %vm4269_vm2, %v4268_v17 }
0x1883   : > { %4004 = vmatprep.subr.bf16.mxu1 %v4268_v17 }
0x1889   : > { %3995 = vmatmul.mubr.msk.bf16.vlgmr.msra.gmra.mrb[84].mxu1 %vm692_vm3, %v2812_v59 }
0x188a   : > { %4006 = vmatprep.mubr.msk.bf16.mxu1 %vm4269_vm2, %v4268_v17 }
0x190a   : > { %v2867_v60 = vpop.xlane.xlu0 %2866 }
0x190b   : > { %v2871_v61 = vsub.f32 %v2863_v46, %v2867_v60 }
0x190d   : > { %v2873_v62 = vmul.f32 1.442695, %v2871_v61 }
0x190f   : > { %4175 = vpow2.f32 %v2873_v62 }
0x1919   : > { %v4176_v0 = vpop.eup %4175 }
0x191a   : > { %v2877_v1 = vsel %vm692_vm3, %v4176_v0, 0.0 }
0x191b   : > { %2878 = vadd.xlane.f32.xlu0 %v2877_v1 }
0x1954   : > { %v2752_v5 = vpop.f32.mrb[80].mxu1 }
0x1955   : > { %v2759_v6 = vadd.f32 %v2752_v5, %v4810_v2  ;;  %v3984_v42 = vpop.f32.mrb[81].mxu1  ;;  %v4101_v5 = vld [vmem:[%s4404_s19] sm:$0xff]  }
0x1956   : > { %v2755_v7 = vpop.f32.mrb[82].mxu1  ;;  %v4103_v42 = vld [vmem:[%s4409_s23] sm:$0xff]  }
0x1957   : > { %v2760_v8 = vadd.f32 %v2755_v7, %v4812_v3  ;;  %v3985_v9 = vpop.f32.mrb[83].mxu1  ;;  %v4104_v7 = vld [vmem:[%s4409_s23 + $0x8] sm:$0xff]  }
0x1958   : > { %v4106_v9 = vld [vmem:[%s4409_s23 + $0x18] sm:$0xff]  }
0x195c   : > { %v2855_v10 = vpop.f32.mrb[84].mxu1 }
0x195d   : > { %v2862_v11 = vmul.f32 0.35355338, %v2855_v10  ;;  %v3996_v12 = vpop.f32.mrb[85].mxu1  ;;  %v4107_v10 = vld [vmem:[%s4409_s23 + $0x20] sm:$0xff]  }
0x195e   : > { %v2858_v13 = vpop.f32.mrb[86].mxu1 }
0x195f   : > { %v3997_v14 = vpop.f32.mrb[87].mxu1  ;;  %v2864_v15 = vadd.f32 %v2862_v11, %v4474_v49  ;;  %v4108_v11 = vld [vmem:[%s4409_s23 + $0x28] sm:$0xff]  }
0x1961   : > { %v2868_v16 = vsel %vm692_vm3, %v2864_v15, -inf }
0x1962   : > { %2869 = vmax.xlane.f32.xlu1 %v2868_v16 }
0x1973   : > { %2937 = vrot.lane.b32.xlu1 %v4681_v33, %s4279_s13 }
0x19a8   : > { %v2879_v49 = vpop.xlane.xlu0 %2878 }
0x19ef   : > { %v2870_v18 = vpop.xlane.xlu1 %2869 }
0x19f0   : > { %v2872_v2 = vsub.f32 %v2864_v15, %v2870_v18 }
0x19f2   : > { %v2875_v19 = vmul.f32 1.442695, %v2872_v2  ;;  %v3065_v2 = vsub.s32 2, %v4440_v26 }
0x19f3   : > { %v2938_v20 = vpop.permute.xlu1 %2937 }
0x19f4   : > { %4177 = vpow2.f32 %v2875_v19  ;;  %v2943_v3 = vsel %vm820_vm5, %v2938_v20, 0  ;;  %v4187_v20 = vld [vmem:[%s4374_s15] sm:$0x7] }
0x19f5   : > { %4005 = vmatpush3.bf16.msra.mxu1 %v2943_v3  ;;  %4179 = vrcp.f32 %v2879_v49  ;;  %v3066_v3 = vrot.slane %v4187_v20, %v3065_v2 }
0x19f6   : > { %4016 = vmatprep.subr.bf16.mxu1 %v4268_v17 }
0x19fe   : > { %v4178_v63 = vpop.eup %4177 }
0x19ff   : > { %v2880_v21 = vsel %vm692_vm3, %v4178_v63, 0.0  ;;  %v4180_v33 = vpop.eup %4179 }
0x1a00   : > { %2881 = vadd.xlane.f32.xlu0 %v2880_v21  ;;  %v2885_v4 = vmul.f32 %v4180_v33, %v4176_v0 }
0x1a02   : > { %v2887_v25 = vpack.c.bf16 %v2885_v4, %v2885_v4 }
0x1a16   : > { %2889 = vrot.lane.b32.xlu0 %v4679_v31, %s4279_s13 }
0x1a8d   : > { %v2882_v22 = vpop.xlane.xlu0 %2881 }
0x1a8e   : > { %4181 = vrcp.f32 %v2882_v22 }
0x1a91   : > { %v2890_v23 = vpop.permute.xlu0 %2889 }
0x1a92   : > { %v2895_v24 = vsel %vm820_vm5, %v2890_v23, 0  ;;  %v4109_v23 = vld [vmem:[%s4409_s23 + $0x30] sm:$0xff]  }
0x1a93   : > { %3999 = vmatpush3.bf16.msra.mxu0 %v2895_v24  ;;  %v4110_v24 = vld [vmem:[%s4409_s23 + $0x38] sm:$0xff]  }
0x1a94   : > { %4010 = vmatprep.subr.bf16.mxu0 %v4268_v17 }
0x1a96   : > { %4001 = vmatmul.mubr.msk.bf16.vlgmr.msra.gmra.mrb[72].mxu0 %vm692_vm3, %v2887_v25 }
0x1a97   : > { %4012 = vmatprep.mubr.msk.bf16.mxu0 %vm4269_vm2, %v4268_v17  ;;  %4011 = vmatpush3.bf16.msra.mxu0 %v2990_v41 }
0x1a98   : > { %v4182_v31 = vpop.eup %4181  ;;  %4024 = vmatprep.subr.bf16.mxu0 %v4268_v17 }
0x1a99   : > { %v2886_v27 = vmul.f32 %v4182_v31, %v4178_v63 }
0x1a9b   : > { %v2888_v28 = vpack.c.bf16 %v2886_v27, %v2886_v27 }
0x1a9d   : > { %4007 = vmatmul.mubr.msk.bf16.vlgmr.msra.gmra.mrb[88].mxu1 %vm692_vm3, %v2888_v28 }
0x1a9e   : > { %4020 = vmatprep.mubr.msk.bf16.mxu1 %vm4269_vm2, %v4268_v17  ;;  %4017 = vmatpush3.bf16.msra.mxu1 %v4101_v5 }
0x1a9f   : > { %4018 = vmatprep.subr.bf16.mxu1 %v4268_v17 }
0x1b69   : > { %v2931_v32 = vpop.f32.mrb[72].mxu0 }
0x1b6a   : > { %v4002_v37 = vpop.f32.mrb[73].mxu0 }
0x1b6b   : > { %v2934_v38 = vpop.f32.mrb[74].mxu0 }
0x1b6c   : > { %v4003_v34 = vpop.f32.mrb[75].mxu0 }
0x1b70   : > { %v2979_v29 = vpop.f32.mrb[88].mxu1 }
0x1b71   : > { %v2985_v35 = vpack.c.bf16 %v2979_v29, %v2931_v32  ;;  %v4008_v36 = vpop.f32.mrb[89].mxu1 }
0x1b72   : > { %v2982_v39 = vpop.f32.mrb[90].mxu1  ;;  %v4282_v36 = vmov (!%p3622_p5), 0.0  }
0x1b73   : > { %v4009_v40 = vpop.f32.mrb[91].mxu1  ;;  %4013 = vmatmul.mubr.msk.bf16.vlgmr.msra.gmra.mrb[76].mxu0 %vm692_vm3, %v2985_v35  ;;  %v4190_v35 = vld [vmem:[%s4997_s9] sm:$0xff] (!%p3622_p5)   ;;  %v4191_v39 = vld [vmem:[%s4997_s9 + $0x8] sm:$0xff] (!%p3622_p5)  }
0x1b74   : > { %4040 = vmatprep.mubr.msk.bf16.mxu0 %vm4269_vm2, %v4268_v17  ;;  %4025 = vmatpush3.bf16.msra.mxu0 %v4103_v42  ;;  %v3341_v40 = vld [vmem:[%s4999_s11] sm:$0xff] (!%p3622_p5) }
0x1b75   : > { %4026 = vmatprep.subr.bf16.mxu0 %v4268_v17 }
0x1b78   : > { %4027 = vmatpush3.bf16.msra.mxu0 %v4104_v7 }
0x1b79   : > { %4028 = vmatprep.subr.bf16.mxu0 %v4268_v17 }
0x1c46   : > { %v3026_v43 = vpop.f32.mrb[76].mxu0 }
0x1c47   : > { %v3033_v44 = vadd.f32 %v3026_v43, %v2759_v6  ;;  %v4014_v45 = vpop.f32.mrb[77].mxu0  ;;  %v4102_v6 = vld [vmem:[%s4404_s19 + $0x8] sm:$0xff]   ;;  %v4284_v43 = vmov (!%p3622_p5), 0  }
0x1c48   : > { %v3029_v46 = vpop.f32.mrb[78].mxu0  ;;  %4019 = vmatpush3.bf16.msra.mxu1 %v4102_v6  ;;  %4188 = vset.pattern.permute.xlu1 (!%p3622_p5), %v4284_v43  ;;  %v3342_v45 = vld [vmem:[%s4999_s11 + $0x8] sm:$0xff] (!%p3622_p5) }
0x1c49   : > { %v4875_v48 = vadd.f32 %v3033_v44, %v4644_v54  ;;  %v3034_v50 = vadd.f32 %v3029_v46, %v2760_v8  ;;  %v4015_v51 = vpop.f32.mrb[79].mxu0  ;;  %v4105_v8 = vld [vmem:[%s4409_s23 + $0x10] sm:$0xff]   ;;  %4189 = vset.pattern.permute.xlu0 (!%p3622_p5), %v4284_v43  ;;  %v3623_v46 = vld [vmem:[%s4998_s10] ss:$0 sm:$0xff] (!%p3622_p5) }
0x1c4a   : > { %4029 = vmatpush3.bf16.msra.mxu0 %v4105_v8 }
0x1c4b   : > { %v4878_v52 = vadd.f32 %v3034_v50, %v4647_v57  ;;  %v3037_v53 = vsel %vm585_vm1, %v4875_v48, 0.0  ;;  %4030 = vmatprep.subr.bf16.mxu0 %v4268_v17 }
0x1c4c   : > { %3038 = vadd.xlane.f32.xlu1 %v3037_v53 }
0x1c4d   : > { %v3040_v55 = vsel %vm585_vm1, %v4878_v52, 0.0 }
0x1c4e   : > { %3041 = vadd.xlane.f32.xlu0 %v3040_v55  ;;  %4031 = vmatpush3.bf16.msra.mxu0 %v4106_v9 }
0x1c4f   : > { %4032 = vmatprep.subr.bf16.mxu0 %v4268_v17 }
0x1c52   : > { %4033 = vmatpush3.bf16.msra.mxu0 %v4107_v10 }
0x1c53   : > { %4034 = vmatprep.subr.bf16.mxu0 %v4268_v17 }
0x1c56   : > { %4035 = vmatpush3.bf16.msra.mxu0 %v4108_v11 }
0x1c57   : > { %4036 = vmatprep.subr.bf16.mxu0 %v4268_v17 }
0x1c5a   : > { %4037 = vmatpush3.bf16.msra.mxu0 %v4109_v23 }
0x1c5b   : > { %4038 = vmatprep.subr.bf16.mxu0 %v4268_v17 }
0x1c5e   : > { %4039 = vmatpush3.bf16.msra.mxu0 %v4110_v24 }
0x1c5f   : > { %4044 = vmatprep.subr.bf16.mxu0 (!%p3622_p5), %v4282_v36 }
0x1cd9   : > { %v3039_v56 = vpop.xlane.xlu1 %3038 }
0x1cda   : > { %v3043_v58 = vmul.f32 0.03125, %v3039_v56 }
0x1cdb   : > { %v3042_v54 = vpop.xlane.xlu0 %3041 }
0x1cdc   : > { %v3045_v59 = vsub.f32 %v4875_v48, %v3043_v58  ;;  %v3044_v60 = vmul.f32 0.03125, %v3042_v54 }
0x1cde   : > { %v3046_v57 = vsub.f32 %v4878_v52, %v3044_v60  ;;  %v3047_v61 = vmul.f32 %v3045_v59, %v3045_v59 }
0x1ce0   : > { %v3049_v62 = vsel %vm585_vm1, %v3047_v61, 0.0  ;;  %v3048_v0 = vmul.f32 %v3046_v57, %v3046_v57 }
0x1ce1   : > { %3050 = vadd.xlane.f32.xlu0 %v3049_v62 }
0x1ce2   : > { %v3052_v1 = vsel %vm585_vm1, %v3048_v0, 0.0 }
0x1ce3   : > { %3053 = vadd.xlane.f32.xlu1 %v3052_v1 }
0x1cf4   : > { %3344 = vperm.xlu1 (!%p3622_p5), %4188, %v3341_v40  }
0x1cf8   : > { %3347 = vperm.xlu1 (!%p3622_p5), %4188, %v3342_v45  }
0x1d6e   : > { %v3051_v12 = vpop.xlane.xlu0 %3050 }
0x1d6f   : > { %v3055_v13 = vmul.f32 0.03125, %v3051_v12 }
0x1d70   : > { %v3054_v14 = vpop.xlane.xlu1 %3053 }
0x1d71   : > { %v3057_v15 = vadd.f32 1e-05, %v3055_v13  ;;  %v3056_v16 = vmul.f32 0.03125, %v3054_v14 }
0x1d73   : > { %4183 = vrsqrt.f32 %v3057_v15  ;;  %v3058_v18 = vadd.f32 1e-05, %v3056_v16 }
0x1d74   : > { %v3345_v61 = vpop.permute.xlu1 (!%p3622_p5), %3344 }
0x1d75   : > { %4185 = vrsqrt.f32 %v3058_v18  ;;  %vm3349_vm8 = vcmp.eq.s32.totalorder (!%p3622_p5), %v4470_v47, %v3345_v61 }
0x1d76   : > { %v3627_v5 = vsel (!%p3622_p5), %vm3349_vm8, 1.0, %v4282_v36 }
0x1d78   : > { %v3348_v1 = vpop.permute.xlu1 (!%p3622_p5), %3347 }
0x1d79   : > { %vm3350_vm9 = vcmp.eq.s32.totalorder (!%p3622_p5), %v4470_v47, %v3348_v1 }
0x1d7a   : > { %v3628_v8 = vsel (!%p3622_p5), %vm3350_vm9, 1.0, %v4282_v36 }
0x1d7d   : > { %v4184_v19 = vpop.eup %4183 }
0x1d7e   : > { %v3061_v63 = vmul.f32 %v4184_v19, %v3045_v59 }
0x1d7f   : > { %v4186_v21 = vpop.eup %4185 }
0x1d80   : > { %v3062_v49 = vmul.f32 %v4186_v21, %v3046_v57  ;;  %v3067_v33 = vmul.f32 %v3066_v3, %v3061_v63 }
0x1d82   : > { %v3068_v22 = vmul.f32 %v3066_v3, %v3062_v49 }
0x1d84   : > { %v3069_v4 = vpack.c.bf16 %v3068_v22, %v3067_v33 }
0x1d86   : > { %4021 = vmatmul.mubr.msk.bf16.vlgmr.msra.gmra.mrb[92].mxu1 %vm585_vm1, %v3069_v4 }
0x1e59   : > { %v3123_v25 = vpop.f32.mrb[92].mxu1 }
0x1e5a   : > { %v4022_v31 = vpop.f32.mrb[93].mxu1  ;;  %v3130_v27 = vmax.f32 %v3123_v25, 0.0 }
0x1e5b   : > { %v3126_v26 = vpop.f32.mrb[94].mxu1 }
0x1e5c   : > { %v3131_v28 = vmax.f32 %v3126_v26, 0.0  ;;  %v4023_v30 = vpop.f32.mrb[95].mxu1 }
0x1e5e   : > { %v3132_v41 = vpack.c.bf16 %v3131_v28, %v3130_v27 }
0x1e60   : > { %4041 = vmatmul.mubr.bf16.vlgmr.msra.gmra.mrb[80].mxu0 %v3132_v41 }
0x1e61   : > { %4045 = vmatpush3.bf16.msra.mxu0 (!%p3622_p5), %v4190_v35  ;;  %4048 = vmatprep.mubr.msk.bf16.mxu0 (!%p3622_p5), %vm4283_vm6, %v4282_v36 }
0x1e62   : > { %4046 = vmatprep.subr.bf16.mxu0 (!%p3622_p5), %v4282_v36 }
0x1e65   : > { %4047 = vmatpush3.bf16.msra.mxu0 (!%p3622_p5), %v4191_v39 }
0x1f32   : > { %3245 = sbr.rel (%p3622_p5) target bundleno = 8741 (0x2225), region = 76 }
0x1f33   : > { %v3231_v32 = vpop.f32.mrb[80].mxu0 }
0x1f34   : > { %v3238_v37 = vadd.f32 %v3231_v32, %v4875_v48  ;;  %v4042_v38 = vpop.f32.mrb[81].mxu0 }
0x1f35   : > { %v3234_v34 = vpop.f32.mrb[82].mxu0 }
0x1f36   : > { %3240 = vst.msk [vmem:[#allocation2] sm:$0xff] %vm585_vm1, %v3238_v37  ;;  %v3239_v29 = vadd.f32 %v3234_v34, %v4878_v52  ;;  %v4043_v17 = vpop.f32.mrb[83].mxu0 }
0x1f38   : > { %3241 = vst.msk [vmem:[#allocation2 + $0x8] sm:$0xff] %vm585_vm1, %v3239_v29  ;;  %v3246_v44 = vpack.c.bf16 (!%p3622_p5), %v3239_v29, %v3238_v37 }
0x1f3a   : > { %4049 = vmatmul.mubr.msk.bf16.vlgmr.msra.gmra.mrb[0].mxu0 %vm585_vm1, %v3246_v44 }
0x200d   : > { %v3307_v48 = vpop.f32.mrb[0].mxu0 }
0x200e   : > { %v3308_v50 = vadd.f32 %v3623_v46, %v3307_v48  ;;  %v4050_v51 = vpop.f32.mrb[1].mxu0 }
0x200f   : > { %v3310_v52 = vpop.f32.mrb[2].mxu0 }
0x2010   : > { %3315 = vst.msk [vmem:[#allocation3] sm:$0xff] %vm3314_vm7, %v3308_v50  ;;  %v3311_v53 = vadd.f32 %v3623_v46, %v3310_v52  ;;  %v4051_v55 = vpop.f32.mrb[3].mxu0  ;;  %v3317_v56 = vsel %vm3314_vm7, %v3308_v50, -inf  ;;  %v3355_v7 = vmul.f32 %v3627_v5, %v3308_v50 }
0x2011   : > { %3318 = vmax.xlane.f32.xlu0 %v3317_v56 }
0x2012   : > { %3316 = vst.msk [vmem:[#allocation3 + $0x8] sm:$0xff] %vm3314_vm7, %v3311_v53  ;;  %v3320_v58 = vsel %vm3314_vm7, %v3311_v53, -inf  ;;  %v3357_v10 = vsel %vm3314_vm7, %v3355_v7, 0.0  ;;  %v3356_v12 = vmul.f32 %v3628_v8, %v3311_v53 }
0x2014   : > { %v3360_v13 = vsel %vm3314_vm7, %v3356_v12, 0.0 }
0x2015   : > { %3321 = vmax.xlane.f32.xlu0 %v3320_v58 }
0x209e   : > { %v3319_v54 = vpop.xlane.xlu0 %3318 }
0x209f   : > { %v3323_v59 = vsub.f32 %v3308_v50, %v3319_v54 }
0x20a1   : > { %v3325_v60 = vmul.f32 1.442695, %v3323_v59 }
0x20a2   : > { %v3322_v57 = vpop.xlane.xlu0 %3321 }
0x20a3   : > { %4192 = vpow2.f32 %v3325_v60  ;;  %v3324_v62 = vsub.f32 %v3311_v53, %v3322_v57 }
0x20a5   : > { %v3327_v0 = vmul.f32 1.442695, %v3324_v62 }
0x20a7   : > { %4194 = vpow2.f32 %v3327_v0 }
0x20ad   : > { %v4193_v6 = vpop.eup %4192 }
0x20ae   : > { %v3329_v42 = vsel %vm3314_vm7, %v4193_v6, 0.0 }
0x20af   : > { %3330 = vadd.xlane.f32.xlu0 %v3329_v42 }
0x20b1   : > { %v4195_v9 = vpop.eup %4194 }
0x20b2   : > { %v3332_v11 = vsel %vm3314_vm7, %v4195_v9, 0.0 }
0x20b3   : > { %3358 = vadd.xlane.f32.xlu0 %v3357_v10  ;;  %3333 = vadd.xlane.f32.xlu1 %v3332_v11 }
0x20b7   : > { %3361 = vadd.xlane.f32.xlu0 %v3360_v13 }
0x213c   : > { %v3331_v14 = vpop.xlane.xlu0 %3330 }
0x213d   : > { %4196 = vlog2.f32 %v3331_v14 }
0x2140   : > { %v3334_v47 = vpop.xlane.xlu1 %3333  ;;  %v3359_v18 = vpop.xlane.xlu0 %3358 }
0x2141   : > { %4198 = vlog2.f32 %v3334_v47 }
0x2144   : > { %v3362_v21 = vpop.xlane.xlu0 %3361 }
0x2147   : > { %v4197_v15 = vpop.eup %4196 }
0x2148   : > { %v3336_v16 = vmul.f32 0.6931472, %v4197_v15 }
0x214a   : > { %v3339_v2 = vadd.f32 %v3336_v16, %v3319_v54 }
0x214b   : > { %v4199_v19 = vpop.eup %4198 }
0x214c   : > { %v3338_v20 = vmul.f32 0.6931472, %v4199_v19  ;;  %v3363_v3 = vsub.f32 %v3339_v2, %v3359_v18 }
0x214e   : > { %v3340_v63 = vadd.f32 %v3338_v20, %v3322_v57  ;;  %v3366_v33 = vsel %vm3365_vm10, %v3363_v3, 0.0 }
0x2150   : > { %v3364_v49 = vsub.f32 %v3340_v63, %v3362_v21 }
0x2152   : > { %v3367_v22 = vsel %vm3365_vm10, %v3364_v49, 0.0 }
0x2153   : > { %v3368_v4 = vadd.f32 %v3367_v22, %v3366_v33 }
0x2155   : > { %3369 = vadd.xlane.f32.xlu0 %v3368_v4 }
0x21e2   : > { %v3370_v23 = vpop.xlane.xlu0 %3369 }
0x21e3   : > { %v3371_v24 = vrot.slane %v3370_v23, 4 }
0x21e5   : > { %v3372_v25 = vadd.f32 %v3371_v24, %v3370_v23 }
0x21e7   : > { %v3373_v31 = vrot.slane %v3372_v25, 2 }
0x21e9   : > { %v3374_v26 = vadd.f32 %v3373_v31, %v3372_v25 }
0x21eb   : > { %v3375_v27 = vrot.slane %v3374_v26, 1 }
0x21ed   : > { %v3376_v28 = vadd.f32 %v3375_v27, %v3374_v26 }
0x21ef   : > { %4052 = vpush %v3376_v28 }
0x2220   : > { %s4053_s20 = spop %4052 }
0x2221   : > { %s3378_s22 = smul.f32 0.0625, %s4053_s20 }
0x2223   : > { %v3379_v30 = vstv %s3378_s22 }
0x2224   : > { %3381 = vst.msk [vmem:[#allocation5] sm:$0x1] %vm3380_vm11, %v3379_v30 }
0x2225 PF: > { %p4062_p6 = scmp.eq.s32.totalorder %s4365_s26, 1  ;;  %s4285_s13 = smov [#allocation3]  }
0x2226   : > { %s3388_s25 = sshll.u32 %s4285_s13, 4  ;;  %s3389_s25 = int_to_ptr.vmem [resolvable:$true] %s3388_s25 }
0x2227   : > { %s4200_s30 = scalar_lea.vmem %s3389_s25, 256  ;;  %p4207_p10 = scmp.lt.s32.totalorder %s3389_s25, %s3389_s25 }
0x2228   : > { %p4201_p7 = scmp.ne.s32.totalorder %s3389_s25, %s4200_s30  ;;  %p4208_p11 = scmp.lt.s32.totalorder %s4200_s30, %s4200_s30 }
0x222a   : > { %p4202_p8 = pnand %p4201_p7, %p4062_p6  ;;  %p4209_p12 = por %p4208_p11, %p4207_p10 }
0x222c   : > { %p4203_p9 = pneg %p4202_p8 }
0x222e   : > { %p4210_p13 = pnand %p4209_p12, %p4203_p9 }
0x2230   : > { %4213 = shalt.err (!%p4210_p13)
}
0x2231   : > { %s4214_s2 = scalar_lea.hbm %s5000_s12, 256 }
0x2232   : > { %p4215_p0 = scmp.ne.s32.totalorder %s5000_s12, %s4214_s2  ;;  %p4220_p3 = scmp.lt.u32.totalorder %s4214_s2, %s5000_s12 }
0x2234   : > { %p4216_p1 = pnand %p4215_p0, %p4062_p6 }
0x2236   : > { %p4217_p2 = pneg %p4216_p1 }
0x2238   : > { %p4222_p4 = pnand %p4220_p3, %p4217_p2 }
0x223a   : > { %4225 = shalt.err (!%p4222_p4)
}
0x223b   : > { %s4286_s16 = smov 128   ;;  %s4287_s19 = smov 8  }
0x223c   : > { %4055 = dma.vmem_to_hbm [thread:$0]  (%p4062_p6), %s3389_s25, 256, %s5000_s12, [#allocation4], %s4286_s16, %s4286_s16, %s4287_s19  }
0x223d   : > { %s4288_s27 = smov [#allocation5]  }
0x223e   : > { %s3402_s29 = sshll.u32 %s4288_s27, 4  ;;  %s3403_s29 = int_to_ptr.vmem [resolvable:$true] %s3402_s29 }
0x223f   : > { %s4226_s17 = scalar_lea.vmem %s3403_s29, 16  ;;  %s4232_s20 = scalar_lea.vmem %s3403_s29, 32 }
0x2240   : > { %p4227_p5 = scmp.ne.s32.totalorder %s3403_s29, %s4226_s17  ;;  %p4233_p9 = scmp.lt.s32.totalorder %s3403_s29, %s3403_s29 }
0x2241   : > { %p4234_p10 = scmp.lt.s32.totalorder %s4232_s20, %s4226_s17 }
0x2242   : > { %p4228_p7 = pnand %p4227_p5, %p4062_p6 }
0x2243   : > { %p4235_p11 = por %p4234_p10, %p4233_p9 }
0x2244   : > { %p4229_p8 = pneg %p4228_p7 }
0x2246   : > { %p4236_p12 = pnand %p4235_p11, %p4229_p8 }
0x2248   : > { %4239 = shalt.err (!%p4236_p12)
}
0x2249   : > { %s5010_s30 = sld [smem:[#allocation12_spill]] }
0x224f   : > { %s4240_s21 = scalar_lea.hbm %s5010_s30, 16 }
0x2250   : > { %p4241_p13 = scmp.ne.s32.totalorder %s5010_s30, %s4240_s21  ;;  %p4246_p2 = scmp.lt.u32.totalorder %s4240_s21, %s5010_s30 }
0x2252   : > { %p4242_p0 = pnand %p4241_p13, %p4062_p6 }
0x2254   : > { %p4243_p1 = pneg %p4242_p0 }
0x2256   : > { %p4248_p3 = pnand %p4246_p2, %p4243_p1 }
0x2258   : > { %4251 = shalt.err (!%p4248_p3)
}
0x2259   : > { %4057 = dma.vmem_to_hbm [thread:$0]  (%p4062_p6), %s3403_s29, 16, %s5010_s30, [#allocation6]  }
0x225a   : > { %4257 = dma.done.wait (%p4062_p6), [#allocation4], 256  }
0x225b   : > { %4259 = vsyncadd (%p4062_p6), [#allocation4], 4294967040 }
0x225c   : > { %4261 = dma.done.wait (%p4062_p6), [#allocation6], 16  }
0x225d   : > { %4263 = vsyncadd (%p4062_p6), [#allocation6], 4294967280 }
0x225e PF: > { %s5011_s28 = sld [smem:[#allocation9_spill]] }
0x2264   : > { %s26_s25 = sadd.s32 1, %s5011_s28  }
0x2265   : > { %p23_p4 = scmp.ge.s32.totalorder %s26_s25, 4  }
0x2267   :  { %25 = sbr.rel (!%p23_p4) target bundleno = 6 (0x6), region = 132 }
0x226e   :  { %3419 = vsyncpa [#allocation4], 1 }
0x226f   :  { %3421 = vsyncpa [#allocation4 + $0x1], 1 }
0x2270   :  { %3422 = vsyncpa [#allocation6], 1 }

</bundles_post_ra>
